<compile_context>
chip_gen: v6e
topology: v6e:2x2x1
jax: 0.10.0
libtpu: 0.0.40
codegen_flags: <defaults>
</compile_context>

<pallas_src>
import functools

import jax
import jax.numpy as jnp
from jax.experimental import pallas as pl
from jax.experimental.pallas import tpu as pltpu

_MiB = 1024 * 1024


def _compiler_params(semantics, est_bytes):
    """Only raise the scoped-VMEM limit when the estimated working set needs it."""
    kw = {"dimension_semantics": semantics}
    if est_bytes > 16 * _MiB:
        kw["vmem_limit_bytes"] = int(min(max(est_bytes * 1.3, 32 * _MiB), 100 * _MiB))
    return pltpu.CompilerParams(**kw)


def _largest_tile(n, target):
    """Largest multiple-of-8 divisor of n that is <= target; else n itself."""
    if n <= target:
        return n
    t = (target // 8) * 8
    while t >= 8:
        if n % t == 0:
            return t
        t -= 8
    return n


# --------------------------------------------------------------------------- #
# Kernel 1: EncoderPrenet (3x conv+BN+ReLU, Linear) + ScaledPositionalEncoding #
# --------------------------------------------------------------------------- #
def _prenet_pe_kernel(x_ref, w_ref, s_ref, sh_ref, pw_ref, pe_ref, o_ref, *, n_conv, ksize):
    h = x_ref[0]                                        # (T, D) f32
    T = h.shape[0]
    pad = ksize // 2
    row = jax.lax.broadcasted_iota(jnp.int32, (T, 1), 0)

    # boundary masks depend only on the tap offset -> hoisted out of the layer loop
    masks = {}
    for k in range(ksize):
        off = k - pad
        if off != 0:
            masks[k] = (row + off >= 0) & (row + off < T)

    for l in range(n_conv):
        taps = []
        for k in range(ksize):                          # "same" padding via roll + mask
            off = k - pad
            if off == 0:
                xk = h
            else:
                xk = pltpu.roll(h, shift=(-off) % T, axis=0)
                xk = jnp.where(masks[k], xk, 0.0)
            taps.append(xk.astype(jnp.bfloat16))
        # K taps stacked on the contraction dim -> ONE (T, K*D) x (K*D, D) MXU matmul
        xcat = jnp.concatenate(taps, axis=-1)
        acc = jnp.dot(xcat, w_ref[l], preferred_element_type=jnp.float32)
        # folded BatchNorm (eval-mode running stats) + ReLU
        h = jnp.maximum(acc * s_ref[l] + sh_ref[l], 0.0)

    # final Linear projection; pe already holds proj_b + alpha * PE[pos]
    y = jnp.dot(h.astype(jnp.bfloat16), pw_ref[...], preferred_element_type=jnp.float32)
    o_ref[0] = y + pe_ref[0]


def prenet_positional(x, conv_w, bn_scale, bn_shift, proj_w, pe_bias):
    B, T, D = x.shape
    n_conv, KD, _ = conv_w.shape
    K = KD // D
    const1 = pl.Buffered(1)                             # constant-index weights: 1 buffer
    est = (2 * 2 * T * D * 4                            # x + pe tiles (double-buffered)
           + 2 * T * D * 4                              # output tile (double-buffered)
           + n_conv * KD * D * 2 + D * D * 2            # bf16 weights, single-buffered
           + T * KD * 2 + 3 * T * D * 4)                # in-kernel temporaries
    return pl.pallas_call(
        functools.partial(_prenet_pe_kernel, n_conv=n_conv, ksize=K),
        out_shape=jax.ShapeDtypeStruct((B, T, D), jnp.float32),
        grid=(B,),
        in_specs=[
            pl.BlockSpec((1, T, D), lambda b: (b, 0, 0)),
            pl.BlockSpec((n_conv, KD, D), lambda b: (0, 0, 0), pipeline_mode=const1),
            pl.BlockSpec((n_conv, 1, D), lambda b: (0, 0, 0), pipeline_mode=const1),
            pl.BlockSpec((n_conv, 1, D), lambda b: (0, 0, 0), pipeline_mode=const1),
            pl.BlockSpec((D, D), lambda b: (0, 0), pipeline_mode=const1),
            pl.BlockSpec((1, T, D), lambda b: (b, 0, 0)),
        ],
        out_specs=pl.BlockSpec((1, T, D), lambda b: (b, 0, 0)),
        compiler_params=_compiler_params(("parallel",), est),
    )(x, conv_w, bn_scale, bn_shift, proj_w, pe_bias)


# --------------------------------------------------------------------------- #
# Kernel 2: fused MHA block  ->  LN1( x + OutProj(Attention(QKV(x))) )         #
# grid = (B, T // tq): per-batch, query-row tiled; K/V computed from full seq  #
# --------------------------------------------------------------------------- #
def _mha_block_kernel(xq_ref, x_ref, wq_ref, bq_ref, wkv_ref, bkv_ref,
                      wo_ref, bo_ref, g_ref, b_ref, o_ref, *, num_heads, eps):
    xq = xq_ref[0]                                      # (tq, D) f32  (query rows)
    x = x_ref[0]                                        # (T,  D) f32  (key/value rows)
    D = xq.shape[1]
    dh = D // num_heads

    # full-width lane-dense projections; 1/sqrt(dh) is folded into wq/bq at init
    q = jnp.dot(xq.astype(jnp.bfloat16), wq_ref[...],
                preferred_element_type=jnp.float32) + bq_ref[...]       # (tq, D)
    kv = jnp.dot(x.astype(jnp.bfloat16), wkv_ref[...],
                 preferred_element_type=jnp.float32) + bkv_ref[...]     # (T, 2D)
    qb = q.astype(jnp.bfloat16)
    kvb = kv.astype(jnp.bfloat16)

    heads = []
    for h in range(num_heads):                          # per-head slices of the slabs
        q_h = qb[:, h * dh:(h + 1) * dh]
        k_h = kvb[:, h * dh:(h + 1) * dh]
        v_h = kvb[:, D + h * dh:D + (h + 1) * dh]
        s = jax.lax.dot_general(q_h, k_h, (((1,), (1,)), ((), ())),
                                preferred_element_type=jnp.float32)     # (tq, T)
        s = s - jnp.max(s, axis=-1, keepdims=True)
        p = jnp.exp(s)
        p = p * pl.reciprocal(jnp.sum(p, axis=-1, keepdims=True), approx=True)
        heads.append(jnp.dot(p.astype(jnp.bfloat16), v_h,
                             preferred_element_type=jnp.float32).astype(jnp.bfloat16))
    # concat-of-heads + ONE (tq, D) x (D, D) output projection
    y = jnp.dot(jnp.concatenate(heads, axis=-1), wo_ref[...],
                preferred_element_type=jnp.float32) + bo_ref[...]

    # residual + LayerNorm1 (post-norm)
    res = xq + y
    mean = jnp.mean(res, axis=-1, keepdims=True)
    var = jnp.mean((res - mean) ** 2, axis=-1, keepdims=True)
    o_ref[0] = (res - mean) * jax.lax.rsqrt(var + eps) * g_ref[...] + b_ref[...]


def mha_block(x, wq, bq, wkv, bkv, wo, bo, ln_g, ln_b, num_heads, eps=1e-5, tq_target=256):
    B, T, D = x.shape
    tq = _largest_tile(T, tq_target)
    nq = T // tq
    const1 = pl.Buffered(1)
    est = (2 * (tq * D + T * D + tq * D) * 4            # xq / x inputs + out tiles (dbl-buf)
           + 4 * D * D * 2 + 8 * D * 4                  # wq + wkv + wo (bf16, 1-buf) + biases/LN
           + (tq * D + 2 * T * D) * 4                   # q / kv f32 temps
           + num_heads * tq * T * 4 + tq * D * 2)       # score + head temps (upper bound)
    return pl.pallas_call(
        functools.partial(_mha_block_kernel, num_heads=num_heads, eps=eps),
        out_shape=jax.ShapeDtypeStruct((B, T, D), jnp.float32),
        grid=(B, nq),
        in_specs=[
            pl.BlockSpec((1, tq, D), lambda b, i: (b, i, 0)),           # query rows
            pl.BlockSpec((1, T, D), lambda b, i: (b, 0, 0)),            # full seq for K/V
            pl.BlockSpec((D, D), lambda b, i: (0, 0), pipeline_mode=const1),
            pl.BlockSpec((1, D), lambda b, i: (0, 0), pipeline_mode=const1),
            pl.BlockSpec((D, 2 * D), lambda b, i: (0, 0), pipeline_mode=const1),
            pl.BlockSpec((1, 2 * D), lambda b, i: (0, 0), pipeline_mode=const1),
            pl.BlockSpec((D, D), lambda b, i: (0, 0), pipeline_mode=const1),
            pl.BlockSpec((1, D), lambda b, i: (0, 0), pipeline_mode=const1),
            pl.BlockSpec((1, D), lambda b, i: (0, 0), pipeline_mode=const1),
            pl.BlockSpec((1, D), lambda b, i: (0, 0), pipeline_mode=const1),
        ],
        out_specs=pl.BlockSpec((1, tq, D), lambda b, i: (b, i, 0)),
        compiler_params=_compiler_params(("parallel", "parallel"), est),
    )(x, x, wq, bq, wkv, bkv, wo, bo, ln_g, ln_b)


# --------------------------------------------------------------------------- #
# Kernel 3: fused FFN block  ->  LN2( x + W2 relu(W1 x + b1) + b2 )            #
# row-tiled along M = B*T (padded to a tile multiple; no giant-tile fallback)  #
# --------------------------------------------------------------------------- #
def _ffn_block_kernel(x_ref, w1_ref, b1_ref, w2_ref, b2_ref, g_ref, b_ref, o_ref, *, eps):
    x = x_ref[...]                                      # (tm, D) f32
    h = jnp.dot(x.astype(jnp.bfloat16), w1_ref[...],
                preferred_element_type=jnp.float32) + b1_ref[...]
    h = jnp.maximum(h, 0.0)
    y = jnp.dot(h.astype(jnp.bfloat16), w2_ref[...],
                preferred_element_type=jnp.float32) + b2_ref[...]
    res = x + y
    mean = jnp.mean(res, axis=-1, keepdims=True)
    var = jnp.mean((res - mean) ** 2, axis=-1, keepdims=True)
    o_ref[...] = (res - mean) * jax.lax.rsqrt(var + eps) * g_ref[...] + b_ref[...]


def ffn_block(x2, w1, b1, w2, b2, ln_g, ln_b, eps=1e-5, tm_target=256):
    M, D = x2.shape
    F = w1.shape[1]
    if M <= tm_target:
        tm, Mp = M, M
    else:
        tm = tm_target
        Mp = ((M + tm - 1) // tm) * tm                  # pad ragged M instead of tm=M fallback
    xin = x2 if Mp == M else jnp.pad(x2, ((0, Mp - M), (0, 0)))
    const1 = pl.Buffered(1)
    est = (2 * 2 * tm * D * 4                           # in + out tiles (double-buffered)
           + 2 * D * F * 2                              # w1 + w2 bf16, single-buffered
           + tm * F * 4 + tm * D * 4)                   # intermediates
    out = pl.pallas_call(
        functools.partial(_ffn_block_kernel, eps=eps),
        out_shape=jax.ShapeDtypeStruct((Mp, D), jnp.float32),
        grid=(Mp // tm,),
        in_specs=[
            pl.BlockSpec((tm, D), lambda i: (i, 0)),
            pl.BlockSpec((D, F), lambda i: (0, 0), pipeline_mode=const1),
            pl.BlockSpec((1, F), lambda i: (0, 0), pipeline_mode=const1),
            pl.BlockSpec((F, D), lambda i: (0, 0), pipeline_mode=const1),
            pl.BlockSpec((1, D), lambda i: (0, 0), pipeline_mode=const1),
            pl.BlockSpec((1, D), lambda i: (0, 0), pipeline_mode=const1),
            pl.BlockSpec((1, D), lambda i: (0, 0), pipeline_mode=const1),
        ],
        out_specs=pl.BlockSpec((tm, D), lambda i: (i, 0)),
        compiler_params=_compiler_params(("parallel",), est),
    )(xin, w1, b1, w2, b2, ln_g, ln_b)
    return out if Mp == M else out[:M]


# --------------------------------------------------------------------------- #
# Parameter construction (deterministic, synthetic)                            #
# --------------------------------------------------------------------------- #
def _sinusoid_table(n_position, d_model):
    pos = jnp.arange(n_position, dtype=jnp.float32)[:, None]
    i = jnp.arange(d_model)[None, :]
    angle = pos / jnp.power(10000.0, (2.0 * (i // 2)).astype(jnp.float32) / d_model)
    pe = jnp.where(i % 2 == 0, jnp.sin(angle), jnp.cos(angle))
    return pe.at[0].set(0.0)                            # padding_idx = 0


def init_params(key, d_model, num_heads, num_layers,
                embedding_size=91, max_position_encoding=4096 * 2, kernel_size=5):
    assert d_model % num_heads == 0
    D, H, F, K = d_model, num_heads, d_model * 4, kernel_size
    dh = D // H
    scale = 1.0 / (dh ** 0.5)
    keys = iter(jax.random.split(key, 256))
    nxt = lambda: next(keys)
    bf16 = jnp.bfloat16

    emb = 0.1 * jax.random.normal(nxt(), (embedding_size, D), jnp.float32)
    emb = emb.at[0].set(0.0)                            # padding_idx = 0

    # conv weights stacked per tap along the contraction dim: row block k is tap k's (D, D)
    conv_w = (jax.random.normal(nxt(), (3, K, D, D), jnp.float32) / jnp.sqrt(K * D))
    conv_w = conv_w.reshape(3, K * D, D).astype(bf16)
    # folded BatchNorm (gamma=1, beta=0, running mean=0, var=1, eval mode)
    bn_scale = jnp.full((3, 1, D), 1.0 / jnp.sqrt(1.0 + 1e-5), jnp.float32)
    bn_shift = jnp.zeros((3, 1, D), jnp.float32)

    proj_w = (jax.random.normal(nxt(), (D, D), jnp.float32) / jnp.sqrt(D)).astype(bf16)
    proj_b = 0.01 * jax.random.normal(nxt(), (1, D), jnp.float32)

    layers = []
    for _ in range(num_layers):
        wq = jax.random.normal(nxt(), (D, D), jnp.float32) / jnp.sqrt(D)
        wk = jax.random.normal(nxt(), (D, D), jnp.float32) / jnp.sqrt(D)
        wv = jax.random.normal(nxt(), (D, D), jnp.float32) / jnp.sqrt(D)
        layers.append({
            "wq": (wq * scale).astype(bf16),            # 1/sqrt(dh) folded into the Q proj
            "bq": jnp.zeros((1, D), jnp.float32) * scale,
            "wkv": jnp.concatenate([wk, wv], axis=1).astype(bf16),     # [D, 2D] = [K | V]
            "bkv": jnp.zeros((1, 2 * D), jnp.float32),
            "wo": (jax.random.normal(nxt(), (D, D), jnp.float32) / jnp.sqrt(D)).astype(bf16),
            "bo": jnp.zeros((1, D), jnp.float32),
            "ln1_g": jnp.ones((1, D), jnp.float32), "ln1_b": jnp.zeros((1, D), jnp.float32),
            "w1": (jax.random.normal(nxt(), (D, F), jnp.float32) / jnp.sqrt(D)).astype(bf16),
            "b1": jnp.zeros((1, F), jnp.float32),
            "w2": (jax.random.normal(nxt(), (F, D), jnp.float32) / jnp.sqrt(F)).astype(bf16),
            "b2": jnp.zeros((1, D), jnp.float32),
            "ln2_g": jnp.ones((1, D), jnp.float32), "ln2_b": jnp.zeros((1, D), jnp.float32),
        })

    return {
        "d_model": D, "num_heads": H,
        "emb": emb, "conv_w": conv_w, "bn_scale": bn_scale, "bn_shift": bn_shift,
        "proj_w": proj_w, "proj_b": proj_b,
        "pe": _sinusoid_table(max_position_encoding, D),
        "alpha": jnp.ones((1,), jnp.float32),           # ScaledPositionalEncoding.alpha
        "layers": layers,
    }


# --------------------------------------------------------------------------- #
# Forward pass                                                                  #
# --------------------------------------------------------------------------- #
def text_encoder_forward(params, text, pos_text):
    B, T = text.shape
    D = params["d_model"]
    H = params["num_heads"]

    # embedding + positional-table lookups as gathers (no one-hot matmul)
    x = jnp.take(params["emb"], text, axis=0)                       # [B, T, D]
    pe_rows = jnp.take(params["pe"], pos_text, axis=0)              # [B, T, D]
    # precompute alpha*PE + final-Linear bias in the XLA wrapper (drops in-kernel scalar work)
    pe_bias = params["alpha"] * pe_rows + params["proj_b"]

    # EncoderPrenet (3x conv+BN+ReLU, Linear) + ScaledPositionalEncoding: one kernel
    x = prenet_positional(x, params["conv_w"], params["bn_scale"], params["bn_shift"],
                          params["proj_w"], pe_bias)

    # TransformerEncoder (post-norm, batch_first, ReLU FFN): 2 kernels per layer
    for lyr in params["layers"]:
        x = mha_block(x, lyr["wq"], lyr["bq"], lyr["wkv"], lyr["bkv"],
                      lyr["wo"], lyr["bo"], lyr["ln1_g"], lyr["ln1_b"], H)     # LN1(x+MHA)
        x = ffn_block(x.reshape(B * T, D), lyr["w1"], lyr["b1"], lyr["w2"], lyr["b2"],
                      lyr["ln2_g"], lyr["ln2_b"]).reshape(B, T, D)             # LN2(x+FFN)
    return x


# --------------------------------------------------------------------------- #
if __name__ == "__main__":
    B, T = 2, 8
    d_model, num_heads, num_layers = 32, 2, 2

    params = init_params(jax.random.PRNGKey(0), d_model, num_heads, num_layers)

    k_text, _ = jax.random.split(jax.random.PRNGKey(0))
    text = jax.random.randint(k_text, (B, T), 1, 91, dtype=jnp.int32)        # token ids
    pos_text = jnp.broadcast_to(jnp.arange(1, T + 1, dtype=jnp.int32), (B, T))

    fwd = jax.jit(lambda t, p: text_encoder_forward(params, t, p))
    out = jax.block_until_ready(fwd(text, pos_text))

    assert out.shape == (B, T, d_model), out.shape
    assert bool(jnp.all(jnp.isfinite(out)))
    print("KERNEL_OK")
</pallas_src>

<mosaic_0001>
module attributes {stable_mosaic.version = 11 : i64} {
  func.func @_prenet_pe_kernel(%arg0: i32, %arg1: memref<1x8x32xf32, #tpu.memory_space<vmem>>, %arg2: memref<3x160x32xbf16, #tpu.memory_space<vmem>>, %arg3: memref<3x1x32xf32, #tpu.memory_space<vmem>>, %arg4: memref<3x1x32xf32, #tpu.memory_space<vmem>>, %arg5: memref<32x32xbf16, #tpu.memory_space<vmem>>, %arg6: memref<1x8x32xf32, #tpu.memory_space<vmem>>, %arg7: memref<1x8x32xf32, #tpu.memory_space<vmem>>) attributes {dimension_semantics = [#tpu.dimension_semantics<parallel>], iteration_bounds = array<i64: 2>, scalar_prefetch = 0 : i64, scratch_operands = 0 : i64, tpu.core_type = #tpu.core_type<tc>, window_params = [{transform_indices = @transform_0, window_bounds = array<i64: 1, 8, 32>}, {pipeline_mode = #tpu.pipeline_mode<synchronous>, transform_indices = @transform_1, window_bounds = array<i64: 3, 160, 32>}, {pipeline_mode = #tpu.pipeline_mode<synchronous>, transform_indices = @transform_2, window_bounds = array<i64: 3, 1, 32>}, {pipeline_mode = #tpu.pipeline_mode<synchronous>, transform_indices = @transform_3, window_bounds = array<i64: 3, 1, 32>}, {pipeline_mode = #tpu.pipeline_mode<synchronous>, transform_indices = @transform_4, window_bounds = array<i64: 32, 32>}, {transform_indices = @transform_5, window_bounds = array<i64: 1, 8, 32>}, {transform_indices = @transform_6, window_bounds = array<i64: 1, 8, 32>}]} {
    %c0 = arith.constant 0 : index
    %c0_0 = arith.constant 0 : index
    %c0_1 = arith.constant 0 : index
    %0 = vector.load %arg1[%c0, %c0_0, %c0_1] : memref<1x8x32xf32, #tpu.memory_space<vmem>>, vector<1x8x32xf32>
    %1 = vector.shape_cast %0 : vector<1x8x32xf32> to vector<8x32xf32>
    %2 = tpu.iota {dimensions = array<i32: 0>} : vector<8x1xi32>
    %c-2_i32 = arith.constant -2 : i32
    %3 = vector.broadcast %c-2_i32 : i32 to vector<8x1xi32>
    %4 = arith.addi %2, %3 : vector<8x1xi32>
    %c0_i32 = arith.constant 0 : i32
    %5 = vector.broadcast %c0_i32 : i32 to vector<8x1xi32>
    %6 = arith.cmpi sge, %4, %5 : vector<8x1xi32>
    %c-2_i32_2 = arith.constant -2 : i32
    %7 = vector.broadcast %c-2_i32_2 : i32 to vector<8x1xi32>
    %8 = arith.addi %2, %7 : vector<8x1xi32>
    %c8_i32 = arith.constant 8 : i32
    %9 = vector.broadcast %c8_i32 : i32 to vector<8x1xi32>
    %10 = arith.cmpi slt, %8, %9 : vector<8x1xi32>
    %11 = arith.andi %6, %10 : vector<8x1xi1>
    %c-1_i32 = arith.constant -1 : i32
    %12 = vector.broadcast %c-1_i32 : i32 to vector<8x1xi32>
    %13 = arith.addi %2, %12 : vector<8x1xi32>
    %c0_i32_3 = arith.constant 0 : i32
    %14 = vector.broadcast %c0_i32_3 : i32 to vector<8x1xi32>
    %15 = arith.cmpi sge, %13, %14 : vector<8x1xi32>
    %c-1_i32_4 = arith.constant -1 : i32
    %16 = vector.broadcast %c-1_i32_4 : i32 to vector<8x1xi32>
    %17 = arith.addi %2, %16 : vector<8x1xi32>
    %c8_i32_5 = arith.constant 8 : i32
    %18 = vector.broadcast %c8_i32_5 : i32 to vector<8x1xi32>
    %19 = arith.cmpi slt, %17, %18 : vector<8x1xi32>
    %20 = arith.andi %15, %19 : vector<8x1xi1>
    %c1_i32 = arith.constant 1 : i32
    %21 = vector.broadcast %c1_i32 : i32 to vector<8x1xi32>
    %22 = arith.addi %2, %21 : vector<8x1xi32>
    %c0_i32_6 = arith.constant 0 : i32
    %23 = vector.broadcast %c0_i32_6 : i32 to vector<8x1xi32>
    %24 = arith.cmpi sge, %22, %23 : vector<8x1xi32>
    %c1_i32_7 = arith.constant 1 : i32
    %25 = vector.broadcast %c1_i32_7 : i32 to vector<8x1xi32>
    %26 = arith.addi %2, %25 : vector<8x1xi32>
    %c8_i32_8 = arith.constant 8 : i32
    %27 = vector.broadcast %c8_i32_8 : i32 to vector<8x1xi32>
    %28 = arith.cmpi slt, %26, %27 : vector<8x1xi32>
    %29 = arith.andi %24, %28 : vector<8x1xi1>
    %c2_i32 = arith.constant 2 : i32
    %30 = vector.broadcast %c2_i32 : i32 to vector<8x1xi32>
    %31 = arith.addi %2, %30 : vector<8x1xi32>
    %c0_i32_9 = arith.constant 0 : i32
    %32 = vector.broadcast %c0_i32_9 : i32 to vector<8x1xi32>
    %33 = arith.cmpi sge, %31, %32 : vector<8x1xi32>
    %c2_i32_10 = arith.constant 2 : i32
    %34 = vector.broadcast %c2_i32_10 : i32 to vector<8x1xi32>
    %35 = arith.addi %2, %34 : vector<8x1xi32>
    %c8_i32_11 = arith.constant 8 : i32
    %36 = vector.broadcast %c8_i32_11 : i32 to vector<8x1xi32>
    %37 = arith.cmpi slt, %35, %36 : vector<8x1xi32>
    %38 = arith.andi %33, %37 : vector<8x1xi1>
    %c2_i32_12 = arith.constant 2 : i32
    %39 = tpu.dynamic_rotate %1 by %c2_i32_12 dim 0 : vector<8x32xf32>, i32 -> vector<8x32xf32>
    %cst = arith.constant 0.000000e+00 : f32
    %40 = vector.shape_cast %11 : vector<8x1xi1> to vector<8x1xi1>
    %41 = vector.broadcast %40 : vector<8x1xi1> to vector<8x32xi1>
    %42 = vector.broadcast %cst : f32 to vector<8x32xf32>
    %43 = arith.select %41, %39, %42 : vector<8x32xi1>, vector<8x32xf32>
    %44 = arith.truncf %43 : vector<8x32xf32> to vector<8x32xbf16>
    %c1_i32_13 = arith.constant 1 : i32
    %45 = tpu.dynamic_rotate %1 by %c1_i32_13 dim 0 : vector<8x32xf32>, i32 -> vector<8x32xf32>
    %cst_14 = arith.constant 0.000000e+00 : f32
    %46 = vector.shape_cast %20 : vector<8x1xi1> to vector<8x1xi1>
    %47 = vector.broadcast %46 : vector<8x1xi1> to vector<8x32xi1>
    %48 = vector.broadcast %cst_14 : f32 to vector<8x32xf32>
    %49 = arith.select %47, %45, %48 : vector<8x32xi1>, vector<8x32xf32>
    %50 = arith.truncf %49 : vector<8x32xf32> to vector<8x32xbf16>
    %51 = arith.truncf %1 : vector<8x32xf32> to vector<8x32xbf16>
    %c7_i32 = arith.constant 7 : i32
    %52 = tpu.dynamic_rotate %1 by %c7_i32 dim 0 : vector<8x32xf32>, i32 -> vector<8x32xf32>
    %cst_15 = arith.constant 0.000000e+00 : f32
    %53 = vector.shape_cast %29 : vector<8x1xi1> to vector<8x1xi1>
    %54 = vector.broadcast %53 : vector<8x1xi1> to vector<8x32xi1>
    %55 = vector.broadcast %cst_15 : f32 to vector<8x32xf32>
    %56 = arith.select %54, %52, %55 : vector<8x32xi1>, vector<8x32xf32>
    %57 = arith.truncf %56 : vector<8x32xf32> to vector<8x32xbf16>
    %c6_i32 = arith.constant 6 : i32
    %58 = tpu.dynamic_rotate %1 by %c6_i32 dim 0 : vector<8x32xf32>, i32 -> vector<8x32xf32>
    %cst_16 = arith.constant 0.000000e+00 : f32
    %59 = vector.shape_cast %38 : vector<8x1xi1> to vector<8x1xi1>
    %60 = vector.broadcast %59 : vector<8x1xi1> to vector<8x32xi1>
    %61 = vector.broadcast %cst_16 : f32 to vector<8x32xf32>
    %62 = arith.select %60, %58, %61 : vector<8x32xi1>, vector<8x32xf32>
    %63 = arith.truncf %62 : vector<8x32xf32> to vector<8x32xbf16>
    %64 = tpu.concatenate %44, %50, %51, %57, %63 in 1 : vector<8x32xbf16>, vector<8x32xbf16>, vector<8x32xbf16>, vector<8x32xbf16>, vector<8x32xbf16> -> vector<8x160xbf16>
    %c0_17 = arith.constant 0 : index
    %c0_18 = arith.constant 0 : index
    %c0_19 = arith.constant 0 : index
    %65 = vector.load %arg2[%c0_17, %c0_18, %c0_19] : memref<3x160x32xbf16, #tpu.memory_space<vmem>>, vector<1x160x32xbf16>
    %66 = vector.shape_cast %65 : vector<1x160x32xbf16> to vector<160x32xbf16>
    %cst_20 = arith.constant dense<0.000000e+00> : vector<8x32xf32>
    %67 = tpu.matmul %64, %66, %cst_20 {dimension_numbers = #tpu.dot_dimension_numbers<[1], [0], [0], [1], [0, 0, 1, 1], [], []>} : vector<8x160xbf16>, vector<160x32xbf16>, vector<8x32xf32> -> vector<8x32xf32>
    %c0_21 = arith.constant 0 : index
    %c0_22 = arith.constant 0 : index
    %c0_23 = arith.constant 0 : index
    %68 = vector.load %arg3[%c0_21, %c0_22, %c0_23] : memref<3x1x32xf32, #tpu.memory_space<vmem>>, vector<1x1x32xf32>
    %69 = vector.shape_cast %68 : vector<1x1x32xf32> to vector<1x32xf32>
    %70 = vector.broadcast %69 : vector<1x32xf32> to vector<8x32xf32>
    %71 = arith.mulf %67, %70 : vector<8x32xf32>
    %c0_24 = arith.constant 0 : index
    %c0_25 = arith.constant 0 : index
    %c0_26 = arith.constant 0 : index
    %72 = vector.load %arg4[%c0_24, %c0_25, %c0_26] : memref<3x1x32xf32, #tpu.memory_space<vmem>>, vector<1x1x32xf32>
    %73 = vector.shape_cast %72 : vector<1x1x32xf32> to vector<1x32xf32>
    %74 = vector.broadcast %73 : vector<1x32xf32> to vector<8x32xf32>
    %75 = arith.addf %71, %74 : vector<8x32xf32>
    %cst_27 = arith.constant 0.000000e+00 : f32
    %76 = vector.broadcast %cst_27 : f32 to vector<8x32xf32>
    %77 = arith.maximumf %75, %76 : vector<8x32xf32>
    %c2_i32_28 = arith.constant 2 : i32
    %78 = tpu.dynamic_rotate %77 by %c2_i32_28 dim 0 : vector<8x32xf32>, i32 -> vector<8x32xf32>
    %cst_29 = arith.constant 0.000000e+00 : f32
    %79 = vector.shape_cast %11 : vector<8x1xi1> to vector<8x1xi1>
    %80 = vector.broadcast %79 : vector<8x1xi1> to vector<8x32xi1>
    %81 = vector.broadcast %cst_29 : f32 to vector<8x32xf32>
    %82 = arith.select %80, %78, %81 : vector<8x32xi1>, vector<8x32xf32>
    %83 = arith.truncf %82 : vector<8x32xf32> to vector<8x32xbf16>
    %c1_i32_30 = arith.constant 1 : i32
    %84 = tpu.dynamic_rotate %77 by %c1_i32_30 dim 0 : vector<8x32xf32>, i32 -> vector<8x32xf32>
    %cst_31 = arith.constant 0.000000e+00 : f32
    %85 = vector.shape_cast %20 : vector<8x1xi1> to vector<8x1xi1>
    %86 = vector.broadcast %85 : vector<8x1xi1> to vector<8x32xi1>
    %87 = vector.broadcast %cst_31 : f32 to vector<8x32xf32>
    %88 = arith.select %86, %84, %87 : vector<8x32xi1>, vector<8x32xf32>
    %89 = arith.truncf %88 : vector<8x32xf32> to vector<8x32xbf16>
    %90 = arith.truncf %77 : vector<8x32xf32> to vector<8x32xbf16>
    %c7_i32_32 = arith.constant 7 : i32
    %91 = tpu.dynamic_rotate %77 by %c7_i32_32 dim 0 : vector<8x32xf32>, i32 -> vector<8x32xf32>
    %cst_33 = arith.constant 0.000000e+00 : f32
    %92 = vector.shape_cast %29 : vector<8x1xi1> to vector<8x1xi1>
    %93 = vector.broadcast %92 : vector<8x1xi1> to vector<8x32xi1>
    %94 = vector.broadcast %cst_33 : f32 to vector<8x32xf32>
    %95 = arith.select %93, %91, %94 : vector<8x32xi1>, vector<8x32xf32>
    %96 = arith.truncf %95 : vector<8x32xf32> to vector<8x32xbf16>
    %c6_i32_34 = arith.constant 6 : i32
    %97 = tpu.dynamic_rotate %77 by %c6_i32_34 dim 0 : vector<8x32xf32>, i32 -> vector<8x32xf32>
    %cst_35 = arith.constant 0.000000e+00 : f32
    %98 = vector.shape_cast %38 : vector<8x1xi1> to vector<8x1xi1>
    %99 = vector.broadcast %98 : vector<8x1xi1> to vector<8x32xi1>
    %100 = vector.broadcast %cst_35 : f32 to vector<8x32xf32>
    %101 = arith.select %99, %97, %100 : vector<8x32xi1>, vector<8x32xf32>
    %102 = arith.truncf %101 : vector<8x32xf32> to vector<8x32xbf16>
    %103 = tpu.concatenate %83, %89, %90, %96, %102 in 1 : vector<8x32xbf16>, vector<8x32xbf16>, vector<8x32xbf16>, vector<8x32xbf16>, vector<8x32xbf16> -> vector<8x160xbf16>
    %c1 = arith.constant 1 : index
    %c0_36 = arith.constant 0 : index
    %c0_37 = arith.constant 0 : index
    %104 = vector.load %arg2[%c1, %c0_36, %c0_37] : memref<3x160x32xbf16, #tpu.memory_space<vmem>>, vector<1x160x32xbf16>
    %105 = vector.shape_cast %104 : vector<1x160x32xbf16> to vector<160x32xbf16>
    %cst_38 = arith.constant dense<0.000000e+00> : vector<8x32xf32>
    %106 = tpu.matmul %103, %105, %cst_38 {dimension_numbers = #tpu.dot_dimension_numbers<[1], [0], [0], [1], [0, 0, 1, 1], [], []>} : vector<8x160xbf16>, vector<160x32xbf16>, vector<8x32xf32> -> vector<8x32xf32>
    %c1_39 = arith.constant 1 : index
    %c0_40 = arith.constant 0 : index
    %c0_41 = arith.constant 0 : index
    %107 = vector.load %arg3[%c1_39, %c0_40, %c0_41] : memref<3x1x32xf32, #tpu.memory_space<vmem>>, vector<1x1x32xf32>
    %108 = vector.shape_cast %107 : vector<1x1x32xf32> to vector<1x32xf32>
    %109 = vector.broadcast %108 : vector<1x32xf32> to vector<8x32xf32>
    %110 = arith.mulf %106, %109 : vector<8x32xf32>
    %c1_42 = arith.constant 1 : index
    %c0_43 = arith.constant 0 : index
    %c0_44 = arith.constant 0 : index
    %111 = vector.load %arg4[%c1_42, %c0_43, %c0_44] : memref<3x1x32xf32, #tpu.memory_space<vmem>>, vector<1x1x32xf32>
    %112 = vector.shape_cast %111 : vector<1x1x32xf32> to vector<1x32xf32>
    %113 = vector.broadcast %112 : vector<1x32xf32> to vector<8x32xf32>
    %114 = arith.addf %110, %113 : vector<8x32xf32>
    %cst_45 = arith.constant 0.000000e+00 : f32
    %115 = vector.broadcast %cst_45 : f32 to vector<8x32xf32>
    %116 = arith.maximumf %114, %115 : vector<8x32xf32>
    %c2_i32_46 = arith.constant 2 : i32
    %117 = tpu.dynamic_rotate %116 by %c2_i32_46 dim 0 : vector<8x32xf32>, i32 -> vector<8x32xf32>
    %cst_47 = arith.constant 0.000000e+00 : f32
    %118 = vector.shape_cast %11 : vector<8x1xi1> to vector<8x1xi1>
    %119 = vector.broadcast %118 : vector<8x1xi1> to vector<8x32xi1>
    %120 = vector.broadcast %cst_47 : f32 to vector<8x32xf32>
    %121 = arith.select %119, %117, %120 : vector<8x32xi1>, vector<8x32xf32>
    %122 = arith.truncf %121 : vector<8x32xf32> to vector<8x32xbf16>
    %c1_i32_48 = arith.constant 1 : i32
    %123 = tpu.dynamic_rotate %116 by %c1_i32_48 dim 0 : vector<8x32xf32>, i32 -> vector<8x32xf32>
    %cst_49 = arith.constant 0.000000e+00 : f32
    %124 = vector.shape_cast %20 : vector<8x1xi1> to vector<8x1xi1>
    %125 = vector.broadcast %124 : vector<8x1xi1> to vector<8x32xi1>
    %126 = vector.broadcast %cst_49 : f32 to vector<8x32xf32>
    %127 = arith.select %125, %123, %126 : vector<8x32xi1>, vector<8x32xf32>
    %128 = arith.truncf %127 : vector<8x32xf32> to vector<8x32xbf16>
    %129 = arith.truncf %116 : vector<8x32xf32> to vector<8x32xbf16>
    %c7_i32_50 = arith.constant 7 : i32
    %130 = tpu.dynamic_rotate %116 by %c7_i32_50 dim 0 : vector<8x32xf32>, i32 -> vector<8x32xf32>
    %cst_51 = arith.constant 0.000000e+00 : f32
    %131 = vector.shape_cast %29 : vector<8x1xi1> to vector<8x1xi1>
    %132 = vector.broadcast %131 : vector<8x1xi1> to vector<8x32xi1>
    %133 = vector.broadcast %cst_51 : f32 to vector<8x32xf32>
    %134 = arith.select %132, %130, %133 : vector<8x32xi1>, vector<8x32xf32>
    %135 = arith.truncf %134 : vector<8x32xf32> to vector<8x32xbf16>
    %c6_i32_52 = arith.constant 6 : i32
    %136 = tpu.dynamic_rotate %116 by %c6_i32_52 dim 0 : vector<8x32xf32>, i32 -> vector<8x32xf32>
    %cst_53 = arith.constant 0.000000e+00 : f32
    %137 = vector.shape_cast %38 : vector<8x1xi1> to vector<8x1xi1>
    %138 = vector.broadcast %137 : vector<8x1xi1> to vector<8x32xi1>
    %139 = vector.broadcast %cst_53 : f32 to vector<8x32xf32>
    %140 = arith.select %138, %136, %139 : vector<8x32xi1>, vector<8x32xf32>
    %141 = arith.truncf %140 : vector<8x32xf32> to vector<8x32xbf16>
    %142 = tpu.concatenate %122, %128, %129, %135, %141 in 1 : vector<8x32xbf16>, vector<8x32xbf16>, vector<8x32xbf16>, vector<8x32xbf16>, vector<8x32xbf16> -> vector<8x160xbf16>
    %c2 = arith.constant 2 : index
    %c0_54 = arith.constant 0 : index
    %c0_55 = arith.constant 0 : index
    %143 = vector.load %arg2[%c2, %c0_54, %c0_55] : memref<3x160x32xbf16, #tpu.memory_space<vmem>>, vector<1x160x32xbf16>
    %144 = vector.shape_cast %143 : vector<1x160x32xbf16> to vector<160x32xbf16>
    %cst_56 = arith.constant dense<0.000000e+00> : vector<8x32xf32>
    %145 = tpu.matmul %142, %144, %cst_56 {dimension_numbers = #tpu.dot_dimension_numbers<[1], [0], [0], [1], [0, 0, 1, 1], [], []>} : vector<8x160xbf16>, vector<160x32xbf16>, vector<8x32xf32> -> vector<8x32xf32>
    %c2_57 = arith.constant 2 : index
    %c0_58 = arith.constant 0 : index
    %c0_59 = arith.constant 0 : index
    %146 = vector.load %arg3[%c2_57, %c0_58, %c0_59] : memref<3x1x32xf32, #tpu.memory_space<vmem>>, vector<1x1x32xf32>
    %147 = vector.shape_cast %146 : vector<1x1x32xf32> to vector<1x32xf32>
    %148 = vector.broadcast %147 : vector<1x32xf32> to vector<8x32xf32>
    %149 = arith.mulf %145, %148 : vector<8x32xf32>
    %c2_60 = arith.constant 2 : index
    %c0_61 = arith.constant 0 : index
    %c0_62 = arith.constant 0 : index
    %150 = vector.load %arg4[%c2_60, %c0_61, %c0_62] : memref<3x1x32xf32, #tpu.memory_space<vmem>>, vector<1x1x32xf32>
    %151 = vector.shape_cast %150 : vector<1x1x32xf32> to vector<1x32xf32>
    %152 = vector.broadcast %151 : vector<1x32xf32> to vector<8x32xf32>
    %153 = arith.addf %149, %152 : vector<8x32xf32>
    %cst_63 = arith.constant 0.000000e+00 : f32
    %154 = vector.broadcast %cst_63 : f32 to vector<8x32xf32>
    %155 = arith.maximumf %153, %154 : vector<8x32xf32>
    %156 = arith.truncf %155 : vector<8x32xf32> to vector<8x32xbf16>
    %c0_64 = arith.constant 0 : index
    %c0_65 = arith.constant 0 : index
    %157 = vector.load %arg5[%c0_64, %c0_65] : memref<32x32xbf16, #tpu.memory_space<vmem>>, vector<32x32xbf16>
    %cst_66 = arith.constant dense<0.000000e+00> : vector<8x32xf32>
    %158 = tpu.matmul %156, %157, %cst_66 {dimension_numbers = #tpu.dot_dimension_numbers<[1], [0], [0], [1], [0, 0, 1, 1], [], []>} : vector<8x32xbf16>, vector<32x32xbf16>, vector<8x32xf32> -> vector<8x32xf32>
    %c0_67 = arith.constant 0 : index
    %c0_68 = arith.constant 0 : index
    %c0_69 = arith.constant 0 : index
    %159 = vector.load %arg6[%c0_67, %c0_68, %c0_69] : memref<1x8x32xf32, #tpu.memory_space<vmem>>, vector<1x8x32xf32>
    %160 = vector.shape_cast %159 : vector<1x8x32xf32> to vector<8x32xf32>
    %161 = arith.addf %158, %160 : vector<8x32xf32>
    %c0_70 = arith.constant 0 : index
    %c0_71 = arith.constant 0 : index
    %c0_72 = arith.constant 0 : index
    %162 = vector.load %arg7[%c0_70, %c0_71, %c0_72] : memref<1x8x32xf32, #tpu.memory_space<vmem>>, vector<1x8x32xf32>
    %163 = vector.shape_cast %162 : vector<1x8x32xf32> to vector<8x32xf32>
    %164 = vector.shape_cast %161 : vector<8x32xf32> to vector<1x8x32xf32>
    tpu.vector_store %arg7[%c0_70, %c0_71, %c0_72], %164 {strides = array<i32>} : memref<1x8x32xf32, #tpu.memory_space<vmem>>, vector<1x8x32xf32>,
    return
  }
  func.func @transform_0(%arg0: i32) -> (i32, i32, i32) {
    %c0_i32 = arith.constant 0 : i32
    %c0_i32_0 = arith.constant 0 : i32
    %c0_i32_1 = arith.constant 0 : i32
    return %arg0, %c0_i32, %c0_i32_0 : i32, i32, i32
  }
  func.func @transform_1(%arg0: i32) -> (i32, i32, i32) {
    %c0_i32 = arith.constant 0 : i32
    %c0_i32_0 = arith.constant 0 : i32
    %c0_i32_1 = arith.constant 0 : i32
    %c0_i32_2 = arith.constant 0 : i32
    return %c0_i32, %c0_i32_0, %c0_i32_1 : i32, i32, i32
  }
  func.func @transform_2(%arg0: i32) -> (i32, i32, i32) {
    %c0_i32 = arith.constant 0 : i32
    %c0_i32_0 = arith.constant 0 : i32
    %c0_i32_1 = arith.constant 0 : i32
    %c0_i32_2 = arith.constant 0 : i32
    return %c0_i32, %c0_i32_0, %c0_i32_1 : i32, i32, i32
  }
  func.func @transform_3(%arg0: i32) -> (i32, i32, i32) {
    %c0_i32 = arith.constant 0 : i32
    %c0_i32_0 = arith.constant 0 : i32
    %c0_i32_1 = arith.constant 0 : i32
    %c0_i32_2 = arith.constant 0 : i32
    return %c0_i32, %c0_i32_0, %c0_i32_1 : i32, i32, i32
  }
  func.func @transform_4(%arg0: i32) -> (i32, i32) {
    %c0_i32 = arith.constant 0 : i32
    %c0_i32_0 = arith.constant 0 : i32
    %c0_i32_1 = arith.constant 0 : i32
    return %c0_i32, %c0_i32_0 : i32, i32
  }
  func.func @transform_5(%arg0: i32) -> (i32, i32, i32) {
    %c0_i32 = arith.constant 0 : i32
    %c0_i32_0 = arith.constant 0 : i32
    %c0_i32_1 = arith.constant 0 : i32
    return %arg0, %c0_i32, %c0_i32_0 : i32, i32, i32
  }
  func.func @transform_6(%arg0: i32) -> (i32, i32, i32) {
    %c0_i32 = arith.constant 0 : i32
    %c0_i32_0 = arith.constant 0 : i32
    %c0_i32_1 = arith.constant 0 : i32
    return %arg0, %c0_i32, %c0_i32_0 : i32, i32, i32
  }
}

module attributes {stable_mosaic.version = 11 : i64} {
  func.func @_ffn_block_kernel(%arg0: i32, %arg1: memref<16x32xf32, #tpu.memory_space<vmem>>, %arg2: memref<32x128xbf16, #tpu.memory_space<vmem>>, %arg3: memref<1x128xf32, #tpu.memory_space<vmem>>, %arg4: memref<128x32xbf16, #tpu.memory_space<vmem>>, %arg5: memref<1x32xf32, #tpu.memory_space<vmem>>, %arg6: memref<1x32xf32, #tpu.memory_space<vmem>>, %arg7: memref<1x32xf32, #tpu.memory_space<vmem>>, %arg8: memref<16x32xf32, #tpu.memory_space<vmem>>) attributes {dimension_semantics = [#tpu.dimension_semantics<parallel>], iteration_bounds = array<i64: 1>, scalar_prefetch = 0 : i64, scratch_operands = 0 : i64, tpu.core_type = #tpu.core_type<tc>, window_params = [{transform_indices = @transform_0, window_bounds = array<i64: 16, 32>}, {pipeline_mode = #tpu.pipeline_mode<synchronous>, transform_indices = @transform_1, window_bounds = array<i64: 32, 128>}, {pipeline_mode = #tpu.pipeline_mode<synchronous>, transform_indices = @transform_2, window_bounds = array<i64: 1, 128>}, {pipeline_mode = #tpu.pipeline_mode<synchronous>, transform_indices = @transform_3, window_bounds = array<i64: 128, 32>}, {pipeline_mode = #tpu.pipeline_mode<synchronous>, transform_indices = @transform_4, window_bounds = array<i64: 1, 32>}, {pipeline_mode = #tpu.pipeline_mode<synchronous>, transform_indices = @transform_5, window_bounds = array<i64: 1, 32>}, {pipeline_mode = #tpu.pipeline_mode<synchronous>, transform_indices = @transform_6, window_bounds = array<i64: 1, 32>}, {transform_indices = @transform_7, window_bounds = array<i64: 16, 32>}]} {
    %c0 = arith.constant 0 : index
    %c0_0 = arith.constant 0 : index
    %0 = vector.load %arg1[%c0, %c0_0] : memref<16x32xf32, #tpu.memory_space<vmem>>, vector<16x32xf32>
    %1 = arith.truncf %0 : vector<16x32xf32> to vector<16x32xbf16>
    %c0_1 = arith.constant 0 : index
    %c0_2 = arith.constant 0 : index
    %2 = vector.load %arg2[%c0_1, %c0_2] : memref<32x128xbf16, #tpu.memory_space<vmem>>, vector<32x128xbf16>
    %cst = arith.constant dense<0.000000e+00> : vector<16x128xf32>
    %3 = tpu.matmul %1, %2, %cst {dimension_numbers = #tpu.dot_dimension_numbers<[1], [0], [0], [1], [0, 0, 1, 1], [], []>} : vector<16x32xbf16>, vector<32x128xbf16>, vector<16x128xf32> -> vector<16x128xf32>
    %c0_3 = arith.constant 0 : index
    %c0_4 = arith.constant 0 : index
    %4 = vector.load %arg3[%c0_3, %c0_4] : memref<1x128xf32, #tpu.memory_space<vmem>>, vector<1x128xf32>
    %5 = vector.broadcast %4 : vector<1x128xf32> to vector<16x128xf32>
    %6 = arith.addf %3, %5 : vector<16x128xf32>
    %cst_5 = arith.constant 0.000000e+00 : f32
    %7 = vector.broadcast %cst_5 : f32 to vector<16x128xf32>
    %8 = arith.maximumf %6, %7 : vector<16x128xf32>
    %9 = arith.truncf %8 : vector<16x128xf32> to vector<16x128xbf16>
    %c0_6 = arith.constant 0 : index
    %c0_7 = arith.constant 0 : index
    %10 = vector.load %arg4[%c0_6, %c0_7] : memref<128x32xbf16, #tpu.memory_space<vmem>>, vector<128x32xbf16>
    %cst_8 = arith.constant dense<0.000000e+00> : vector<16x32xf32>
    %11 = tpu.matmul %9, %10, %cst_8 {dimension_numbers = #tpu.dot_dimension_numbers<[1], [0], [0], [1], [0, 0, 1, 1], [], []>} : vector<16x128xbf16>, vector<128x32xbf16>, vector<16x32xf32> -> vector<16x32xf32>
    %c0_9 = arith.constant 0 : index
    %c0_10 = arith.constant 0 : index
    %12 = vector.load %arg5[%c0_9, %c0_10] : memref<1x32xf32, #tpu.memory_space<vmem>>, vector<1x32xf32>
    %13 = vector.broadcast %12 : vector<1x32xf32> to vector<16x32xf32>
    %14 = arith.addf %11, %13 : vector<16x32xf32>
    %15 = arith.addf %0, %14 : vector<16x32xf32>
    %cst_11 = arith.constant dense<0.000000e+00> : vector<16xf32>
    %16 = vector.multi_reduction <add>, %15, %cst_11 [1] : vector<16x32xf32> to vector<16xf32>
    %17 = vector.shape_cast %16 : vector<16xf32> to vector<16x1xf32>
    %cst_12 = arith.constant 3.200000e+01 : f32
    %18 = vector.broadcast %cst_12 : f32 to vector<16x1xf32>
    %19 = arith.divf %17, %18 : vector<16x1xf32>
    %20 = vector.broadcast %19 : vector<16x1xf32> to vector<16x32xf32>
    %21 = arith.subf %15, %20 : vector<16x32xf32>
    %22 = arith.mulf %21, %21 : vector<16x32xf32>
    %cst_13 = arith.constant dense<0.000000e+00> : vector<16xf32>
    %23 = vector.multi_reduction <add>, %22, %cst_13 [1] : vector<16x32xf32> to vector<16xf32>
    %24 = vector.shape_cast %23 : vector<16xf32> to vector<16x1xf32>
    %cst_14 = arith.constant 3.200000e+01 : f32
    %25 = vector.broadcast %cst_14 : f32 to vector<16x1xf32>
    %26 = arith.divf %24, %25 : vector<16x1xf32>
    %27 = vector.broadcast %19 : vector<16x1xf32> to vector<16x32xf32>
    %28 = arith.subf %15, %27 : vector<16x32xf32>
    %cst_15 = arith.constant 9.99999974E-6 : f32
    %29 = vector.broadcast %cst_15 : f32 to vector<16x1xf32>
    %30 = arith.addf %26, %29 : vector<16x1xf32>
    %31 = math.rsqrt %30 : vector<16x1xf32>
    %32 = vector.broadcast %31 : vector<16x1xf32> to vector<16x32xf32>
    %33 = arith.mulf %28, %32 : vector<16x32xf32>
    %c0_16 = arith.constant 0 : index
    %c0_17 = arith.constant 0 : index
    %34 = vector.load %arg6[%c0_16, %c0_17] : memref<1x32xf32, #tpu.memory_space<vmem>>, vector<1x32xf32>
    %35 = vector.broadcast %34 : vector<1x32xf32> to vector<16x32xf32>
    %36 = arith.mulf %33, %35 : vector<16x32xf32>
    %c0_18 = arith.constant 0 : index
    %c0_19 = arith.constant 0 : index
    %37 = vector.load %arg7[%c0_18, %c0_19] : memref<1x32xf32, #tpu.memory_space<vmem>>, vector<1x32xf32>
    %38 = vector.broadcast %37 : vector<1x32xf32> to vector<16x32xf32>
    %39 = arith.addf %36, %38 : vector<16x32xf32>
    %c0_20 = arith.constant 0 : index
    %c0_21 = arith.constant 0 : index
    %40 = vector.load %arg8[%c0_20, %c0_21] : memref<16x32xf32, #tpu.memory_space<vmem>>, vector<16x32xf32>
    tpu.vector_store %arg8[%c0_20, %c0_21], %39 {strides = array<i32>} : memref<16x32xf32, #tpu.memory_space<vmem>>, vector<16x32xf32>,
    return
  }
  func.func @transform_0(%arg0: i32) -> (i32, i32) {
    %c0_i32 = arith.constant 0 : i32
    %c0_i32_0 = arith.constant 0 : i32
    return %arg0, %c0_i32 : i32, i32
  }
  func.func @transform_1(%arg0: i32) -> (i32, i32) {
    %c0_i32 = arith.constant 0 : i32
    %c0_i32_0 = arith.constant 0 : i32
    %c0_i32_1 = arith.constant 0 : i32
    return %c0_i32, %c0_i32_0 : i32, i32
  }
  func.func @transform_2(%arg0: i32) -> (i32, i32) {
    %c0_i32 = arith.constant 0 : i32
    %c0_i32_0 = arith.constant 0 : i32
    %c0_i32_1 = arith.constant 0 : i32
    return %c0_i32, %c0_i32_0 : i32, i32
  }
  func.func @transform_3(%arg0: i32) -> (i32, i32) {
    %c0_i32 = arith.constant 0 : i32
    %c0_i32_0 = arith.constant 0 : i32
    %c0_i32_1 = arith.constant 0 : i32
    return %c0_i32, %c0_i32_0 : i32, i32
  }
  func.func @transform_4(%arg0: i32) -> (i32, i32) {
    %c0_i32 = arith.constant 0 : i32
    %c0_i32_0 = arith.constant 0 : i32
    %c0_i32_1 = arith.constant 0 : i32
    return %c0_i32, %c0_i32_0 : i32, i32
  }
  func.func @transform_5(%arg0: i32) -> (i32, i32) {
    %c0_i32 = arith.constant 0 : i32
    %c0_i32_0 = arith.constant 0 : i32
    %c0_i32_1 = arith.constant 0 : i32
    return %c0_i32, %c0_i32_0 : i32, i32
  }
  func.func @transform_6(%arg0: i32) -> (i32, i32) {
    %c0_i32 = arith.constant 0 : i32
    %c0_i32_0 = arith.constant 0 : i32
    %c0_i32_1 = arith.constant 0 : i32
    return %c0_i32, %c0_i32_0 : i32, i32
  }
  func.func @transform_7(%arg0: i32) -> (i32, i32) {
    %c0_i32 = arith.constant 0 : i32
    %c0_i32_0 = arith.constant 0 : i32
    return %arg0, %c0_i32 : i32, i32
  }
}

module attributes {stable_mosaic.version = 11 : i64} {
  func.func @_ffn_block_kernel(%arg0: i32, %arg1: memref<16x32xf32, #tpu.memory_space<vmem>>, %arg2: memref<32x128xbf16, #tpu.memory_space<vmem>>, %arg3: memref<1x128xf32, #tpu.memory_space<vmem>>, %arg4: memref<128x32xbf16, #tpu.memory_space<vmem>>, %arg5: memref<1x32xf32, #tpu.memory_space<vmem>>, %arg6: memref<1x32xf32, #tpu.memory_space<vmem>>, %arg7: memref<1x32xf32, #tpu.memory_space<vmem>>, %arg8: memref<16x32xf32, #tpu.memory_space<vmem>>) attributes {dimension_semantics = [#tpu.dimension_semantics<parallel>], iteration_bounds = array<i64: 1>, scalar_prefetch = 0 : i64, scratch_operands = 0 : i64, tpu.core_type = #tpu.core_type<tc>, window_params = [{transform_indices = @transform_0, window_bounds = array<i64: 16, 32>}, {pipeline_mode = #tpu.pipeline_mode<synchronous>, transform_indices = @transform_1, window_bounds = array<i64: 32, 128>}, {pipeline_mode = #tpu.pipeline_mode<synchronous>, transform_indices = @transform_2, window_bounds = array<i64: 1, 128>}, {pipeline_mode = #tpu.pipeline_mode<synchronous>, transform_indices = @transform_3, window_bounds = array<i64: 128, 32>}, {pipeline_mode = #tpu.pipeline_mode<synchronous>, transform_indices = @transform_4, window_bounds = array<i64: 1, 32>}, {pipeline_mode = #tpu.pipeline_mode<synchronous>, transform_indices = @transform_5, window_bounds = array<i64: 1, 32>}, {pipeline_mode = #tpu.pipeline_mode<synchronous>, transform_indices = @transform_6, window_bounds = array<i64: 1, 32>}, {transform_indices = @transform_7, window_bounds = array<i64: 16, 32>}]} {
    %c0 = arith.constant 0 : index
    %c0_0 = arith.constant 0 : index
    %0 = vector.load %arg1[%c0, %c0_0] : memref<16x32xf32, #tpu.memory_space<vmem>>, vector<16x32xf32>
    %1 = arith.truncf %0 : vector<16x32xf32> to vector<16x32xbf16>
    %c0_1 = arith.constant 0 : index
    %c0_2 = arith.constant 0 : index
    %2 = vector.load %arg2[%c0_1, %c0_2] : memref<32x128xbf16, #tpu.memory_space<vmem>>, vector<32x128xbf16>
    %cst = arith.constant dense<0.000000e+00> : vector<16x128xf32>
    %3 = tpu.matmul %1, %2, %cst {dimension_numbers = #tpu.dot_dimension_numbers<[1], [0], [0], [1], [0, 0, 1, 1], [], []>} : vector<16x32xbf16>, vector<32x128xbf16>, vector<16x128xf32> -> vector<16x128xf32>
    %c0_3 = arith.constant 0 : index
    %c0_4 = arith.constant 0 : index
    %4 = vector.load %arg3[%c0_3, %c0_4] : memref<1x128xf32, #tpu.memory_space<vmem>>, vector<1x128xf32>
    %5 = vector.broadcast %4 : vector<1x128xf32> to vector<16x128xf32>
    %6 = arith.addf %3, %5 : vector<16x128xf32>
    %cst_5 = arith.constant 0.000000e+00 : f32
    %7 = vector.broadcast %cst_5 : f32 to vector<16x128xf32>
    %8 = arith.maximumf %6, %7 : vector<16x128xf32>
    %9 = arith.truncf %8 : vector<16x128xf32> to vector<16x128xbf16>
    %c0_6 = arith.constant 0 : index
    %c0_7 = arith.constant 0 : index
    %10 = vector.load %arg4[%c0_6, %c0_7] : memref<128x32xbf16, #tpu.memory_space<vmem>>, vector<128x32xbf16>
    %cst_8 = arith.constant dense<0.000000e+00> : vector<16x32xf32>
    %11 = tpu.matmul %9, %10, %cst_8 {dimension_numbers = #tpu.dot_dimension_numbers<[1], [0], [0], [1], [0, 0, 1, 1], [], []>} : vector<16x128xbf16>, vector<128x32xbf16>, vector<16x32xf32> -> vector<16x32xf32>
    %c0_9 = arith.constant 0 : index
    %c0_10 = arith.constant 0 : index
    %12 = vector.load %arg5[%c0_9, %c0_10] : memref<1x32xf32, #tpu.memory_space<vmem>>, vector<1x32xf32>
    %13 = vector.broadcast %12 : vector<1x32xf32> to vector<16x32xf32>
    %14 = arith.addf %11, %13 : vector<16x32xf32>
    %15 = arith.addf %0, %14 : vector<16x32xf32>
    %cst_11 = arith.constant dense<0.000000e+00> : vector<16xf32>
    %16 = vector.multi_reduction <add>, %15, %cst_11 [1] : vector<16x32xf32> to vector<16xf32>
    %17 = vector.shape_cast %16 : vector<16xf32> to vector<16x1xf32>
    %cst_12 = arith.constant 3.200000e+01 : f32
    %18 = vector.broadcast %cst_12 : f32 to vector<16x1xf32>
    %19 = arith.divf %17, %18 : vector<16x1xf32>
    %20 = vector.broadcast %19 : vector<16x1xf32> to vector<16x32xf32>
    %21 = arith.subf %15, %20 : vector<16x32xf32>
    %22 = arith.mulf %21, %21 : vector<16x32xf32>
    %cst_13 = arith.constant dense<0.000000e+00> : vector<16xf32>
    %23 = vector.multi_reduction <add>, %22, %cst_13 [1] : vector<16x32xf32> to vector<16xf32>
    %24 = vector.shape_cast %23 : vector<16xf32> to vector<16x1xf32>
    %cst_14 = arith.constant 3.200000e+01 : f32
    %25 = vector.broadcast %cst_14 : f32 to vector<16x1xf32>
    %26 = arith.divf %24, %25 : vector<16x1xf32>
    %27 = vector.broadcast %19 : vector<16x1xf32> to vector<16x32xf32>
    %28 = arith.subf %15, %27 : vector<16x32xf32>
    %cst_15 = arith.constant 9.99999974E-6 : f32
    %29 = vector.broadcast %cst_15 : f32 to vector<16x1xf32>
    %30 = arith.addf %26, %29 : vector<16x1xf32>
    %31 = math.rsqrt %30 : vector<16x1xf32>
    %32 = vector.broadcast %31 : vector<16x1xf32> to vector<16x32xf32>
    %33 = arith.mulf %28, %32 : vector<16x32xf32>
    %c0_16 = arith.constant 0 : index
    %c0_17 = arith.constant 0 : index
    %34 = vector.load %arg6[%c0_16, %c0_17] : memref<1x32xf32, #tpu.memory_space<vmem>>, vector<1x32xf32>
    %35 = vector.broadcast %34 : vector<1x32xf32> to vector<16x32xf32>
    %36 = arith.mulf %33, %35 : vector<16x32xf32>
    %c0_18 = arith.constant 0 : index
    %c0_19 = arith.constant 0 : index
    %37 = vector.load %arg7[%c0_18, %c0_19] : memref<1x32xf32, #tpu.memory_space<vmem>>, vector<1x32xf32>
    %38 = vector.broadcast %37 : vector<1x32xf32> to vector<16x32xf32>
    %39 = arith.addf %36, %38 : vector<16x32xf32>
    %c0_20 = arith.constant 0 : index
    %c0_21 = arith.constant 0 : index
    %40 = vector.load %arg8[%c0_20, %c0_21] : memref<16x32xf32, #tpu.memory_space<vmem>>, vector<16x32xf32>
    tpu.vector_store %arg8[%c0_20, %c0_21], %39 {strides = array<i32>} : memref<16x32xf32, #tpu.memory_space<vmem>>, vector<16x32xf32>,
    return
  }
  func.func @transform_0(%arg0: i32) -> (i32, i32) {
    %c0_i32 = arith.constant 0 : i32
    %c0_i32_0 = arith.constant 0 : i32
    return %arg0, %c0_i32 : i32, i32
  }
  func.func @transform_1(%arg0: i32) -> (i32, i32) {
    %c0_i32 = arith.constant 0 : i32
    %c0_i32_0 = arith.constant 0 : i32
    %c0_i32_1 = arith.constant 0 : i32
    return %c0_i32, %c0_i32_0 : i32, i32
  }
  func.func @transform_2(%arg0: i32) -> (i32, i32) {
    %c0_i32 = arith.constant 0 : i32
    %c0_i32_0 = arith.constant 0 : i32
    %c0_i32_1 = arith.constant 0 : i32
    return %c0_i32, %c0_i32_0 : i32, i32
  }
  func.func @transform_3(%arg0: i32) -> (i32, i32) {
    %c0_i32 = arith.constant 0 : i32
    %c0_i32_0 = arith.constant 0 : i32
    %c0_i32_1 = arith.constant 0 : i32
    return %c0_i32, %c0_i32_0 : i32, i32
  }
  func.func @transform_4(%arg0: i32) -> (i32, i32) {
    %c0_i32 = arith.constant 0 : i32
    %c0_i32_0 = arith.constant 0 : i32
    %c0_i32_1 = arith.constant 0 : i32
    return %c0_i32, %c0_i32_0 : i32, i32
  }
  func.func @transform_5(%arg0: i32) -> (i32, i32) {
    %c0_i32 = arith.constant 0 : i32
    %c0_i32_0 = arith.constant 0 : i32
    %c0_i32_1 = arith.constant 0 : i32
    return %c0_i32, %c0_i32_0 : i32, i32
  }
  func.func @transform_6(%arg0: i32) -> (i32, i32) {
    %c0_i32 = arith.constant 0 : i32
    %c0_i32_0 = arith.constant 0 : i32
    %c0_i32_1 = arith.constant 0 : i32
    return %c0_i32, %c0_i32_0 : i32, i32
  }
  func.func @transform_7(%arg0: i32) -> (i32, i32) {
    %c0_i32 = arith.constant 0 : i32
    %c0_i32_0 = arith.constant 0 : i32
    return %arg0, %c0_i32 : i32, i32
  }
}

module attributes {stable_mosaic.version = 11 : i64} {
  func.func @_mha_block_kernel(%arg0: i32, %arg1: i32, %arg2: memref<1x8x32xf32, #tpu.memory_space<vmem>>, %arg3: memref<1x8x32xf32, #tpu.memory_space<vmem>>, %arg4: memref<32x32xbf16, #tpu.memory_space<vmem>>, %arg5: memref<1x32xf32, #tpu.memory_space<vmem>>, %arg6: memref<32x64xbf16, #tpu.memory_space<vmem>>, %arg7: memref<1x64xf32, #tpu.memory_space<vmem>>, %arg8: memref<32x32xbf16, #tpu.memory_space<vmem>>, %arg9: memref<1x32xf32, #tpu.memory_space<vmem>>, %arg10: memref<1x32xf32, #tpu.memory_space<vmem>>, %arg11: memref<1x32xf32, #tpu.memory_space<vmem>>, %arg12: memref<1x8x32xf32, #tpu.memory_space<vmem>>) attributes {dimension_semantics = [#tpu.dimension_semantics<parallel>, #tpu.dimension_semantics<parallel>], iteration_bounds = array<i64: 2, 1>, scalar_prefetch = 0 : i64, scratch_operands = 0 : i64, tpu.core_type = #tpu.core_type<tc>, window_params = [{transform_indices = @transform_0, window_bounds = array<i64: 1, 8, 32>}, {transform_indices = @transform_1, window_bounds = array<i64: 1, 8, 32>}, {pipeline_mode = #tpu.pipeline_mode<synchronous>, transform_indices = @transform_2, window_bounds = array<i64: 32, 32>}, {pipeline_mode = #tpu.pipeline_mode<synchronous>, transform_indices = @transform_3, window_bounds = array<i64: 1, 32>}, {pipeline_mode = #tpu.pipeline_mode<synchronous>, transform_indices = @transform_4, window_bounds = array<i64: 32, 64>}, {pipeline_mode = #tpu.pipeline_mode<synchronous>, transform_indices = @transform_5, window_bounds = array<i64: 1, 64>}, {pipeline_mode = #tpu.pipeline_mode<synchronous>, transform_indices = @transform_6, window_bounds = array<i64: 32, 32>}, {pipeline_mode = #tpu.pipeline_mode<synchronous>, transform_indices = @transform_7, window_bounds = array<i64: 1, 32>}, {pipeline_mode = #tpu.pipeline_mode<synchronous>, transform_indices = @transform_8, window_bounds = array<i64: 1, 32>}, {pipeline_mode = #tpu.pipeline_mode<synchronous>, transform_indices = @transform_9, window_bounds = array<i64: 1, 32>}, {transform_indices = @transform_10, window_bounds = array<i64: 1, 8, 32>}]} {
    %c0 = arith.constant 0 : index
    %c0_0 = arith.constant 0 : index
    %c0_1 = arith.constant 0 : index
    %0 = vector.load %arg2[%c0, %c0_0, %c0_1] : memref<1x8x32xf32, #tpu.memory_space<vmem>>, vector<1x8x32xf32>
    %1 = vector.shape_cast %0 : vector<1x8x32xf32> to vector<8x32xf32>
    %c0_2 = arith.constant 0 : index
    %c0_3 = arith.constant 0 : index
    %c0_4 = arith.constant 0 : index
    %2 = vector.load %arg3[%c0_2, %c0_3, %c0_4] : memref<1x8x32xf32, #tpu.memory_space<vmem>>, vector<1x8x32xf32>
    %3 = vector.shape_cast %2 : vector<1x8x32xf32> to vector<8x32xf32>
    %4 = arith.truncf %1 : vector<8x32xf32> to vector<8x32xbf16>
    %c0_5 = arith.constant 0 : index
    %c0_6 = arith.constant 0 : index
    %5 = vector.load %arg4[%c0_5, %c0_6] : memref<32x32xbf16, #tpu.memory_space<vmem>>, vector<32x32xbf16>
    %cst = arith.constant dense<0.000000e+00> : vector<8x32xf32>
    %6 = tpu.matmul %4, %5, %cst {dimension_numbers = #tpu.dot_dimension_numbers<[1], [0], [0], [1], [0, 0, 1, 1], [], []>} : vector<8x32xbf16>, vector<32x32xbf16>, vector<8x32xf32> -> vector<8x32xf32>
    %c0_7 = arith.constant 0 : index
    %c0_8 = arith.constant 0 : index
    %7 = vector.load %arg5[%c0_7, %c0_8] : memref<1x32xf32, #tpu.memory_space<vmem>>, vector<1x32xf32>
    %8 = vector.broadcast %7 : vector<1x32xf32> to vector<8x32xf32>
    %9 = arith.addf %6, %8 : vector<8x32xf32>
    %10 = arith.truncf %3 : vector<8x32xf32> to vector<8x32xbf16>
    %c0_9 = arith.constant 0 : index
    %c0_10 = arith.constant 0 : index
    %11 = vector.load %arg6[%c0_9, %c0_10] : memref<32x64xbf16, #tpu.memory_space<vmem>>, vector<32x64xbf16>
    %cst_11 = arith.constant dense<0.000000e+00> : vector<8x64xf32>
    %12 = tpu.matmul %10, %11, %cst_11 {dimension_numbers = #tpu.dot_dimension_numbers<[1], [0], [0], [1], [0, 0, 1, 1], [], []>} : vector<8x32xbf16>, vector<32x64xbf16>, vector<8x64xf32> -> vector<8x64xf32>
    %c0_12 = arith.constant 0 : index
    %c0_13 = arith.constant 0 : index
    %13 = vector.load %arg7[%c0_12, %c0_13] : memref<1x64xf32, #tpu.memory_space<vmem>>, vector<1x64xf32>
    %14 = vector.broadcast %13 : vector<1x64xf32> to vector<8x64xf32>
    %15 = arith.addf %12, %14 : vector<8x64xf32>
    %16 = arith.truncf %9 : vector<8x32xf32> to vector<8x32xbf16>
    %17 = arith.truncf %15 : vector<8x64xf32> to vector<8x64xbf16>
    %18 = vector.extract_strided_slice %16 {offsets = [0, 0], sizes = [8, 16], strides = [1, 1]} : vector<8x32xbf16> to vector<8x16xbf16>
    %19 = vector.extract_strided_slice %17 {offsets = [0, 0], sizes = [8, 16], strides = [1, 1]} : vector<8x64xbf16> to vector<8x16xbf16>
    %20 = vector.extract_strided_slice %17 {offsets = [0, 32], sizes = [8, 16], strides = [1, 1]} : vector<8x64xbf16> to vector<8x16xbf16>
    %cst_14 = arith.constant dense<0.000000e+00> : vector<8x8xf32>
    %21 = tpu.matmul %18, %19, %cst_14 {dimension_numbers = #tpu.dot_dimension_numbers<[1], [1], [0], [0], [0, 0, 1, 0], [], []>} : vector<8x16xbf16>, vector<8x16xbf16>, vector<8x8xf32> -> vector<8x8xf32>
    %cst_15 = arith.constant dense<0xFF800000> : vector<8xf32>
    %22 = vector.multi_reduction <maximumf>, %21, %cst_15 [1] : vector<8x8xf32> to vector<8xf32>
    %23 = vector.shape_cast %22 : vector<8xf32> to vector<8x1xf32>
    %24 = vector.broadcast %23 : vector<8x1xf32> to vector<8x8xf32>
    %25 = arith.subf %21, %24 : vector<8x8xf32>
    %26 = math.exp %25 : vector<8x8xf32>
    %cst_16 = arith.constant dense<0.000000e+00> : vector<8xf32>
    %27 = vector.multi_reduction <add>, %26, %cst_16 [1] : vector<8x8xf32> to vector<8xf32>
    %28 = vector.shape_cast %27 : vector<8xf32> to vector<8x1xf32>
    %29 = tpu.reciprocal %28 {approx = true} : vector<8x1xf32> -> vector<8x1xf32>
    %30 = vector.broadcast %29 : vector<8x1xf32> to vector<8x8xf32>
    %31 = arith.mulf %26, %30 : vector<8x8xf32>
    %32 = arith.truncf %31 : vector<8x8xf32> to vector<8x8xbf16>
    %cst_17 = arith.constant dense<0.000000e+00> : vector<8x16xf32>
    %33 = tpu.matmul %32, %20, %cst_17 {dimension_numbers = #tpu.dot_dimension_numbers<[1], [0], [0], [1], [0, 0, 1, 1], [], []>} : vector<8x8xbf16>, vector<8x16xbf16>, vector<8x16xf32> -> vector<8x16xf32>
    %34 = arith.truncf %33 : vector<8x16xf32> to vector<8x16xbf16>
    %35 = vector.extract_strided_slice %16 {offsets = [0, 16], sizes = [8, 16], strides = [1, 1]} : vector<8x32xbf16> to vector<8x16xbf16>
    %36 = vector.extract_strided_slice %17 {offsets = [0, 16], sizes = [8, 16], strides = [1, 1]} : vector<8x64xbf16> to vector<8x16xbf16>
    %37 = vector.extract_strided_slice %17 {offsets = [0, 48], sizes = [8, 16], strides = [1, 1]} : vector<8x64xbf16> to vector<8x16xbf16>
    %cst_18 = arith.constant dense<0.000000e+00> : vector<8x8xf32>
    %38 = tpu.matmul %35, %36, %cst_18 {dimension_numbers = #tpu.dot_dimension_numbers<[1], [1], [0], [0], [0, 0, 1, 0], [], []>} : vector<8x16xbf16>, vector<8x16xbf16>, vector<8x8xf32> -> vector<8x8xf32>
    %cst_19 = arith.constant dense<0xFF800000> : vector<8xf32>
    %39 = vector.multi_reduction <maximumf>, %38, %cst_19 [1] : vector<8x8xf32> to vector<8xf32>
    %40 = vector.shape_cast %39 : vector<8xf32> to vector<8x1xf32>
    %41 = vector.broadcast %40 : vector<8x1xf32> to vector<8x8xf32>
    %42 = arith.subf %38, %41 : vector<8x8xf32>
    %43 = math.exp %42 : vector<8x8xf32>
    %cst_20 = arith.constant dense<0.000000e+00> : vector<8xf32>
    %44 = vector.multi_reduction <add>, %43, %cst_20 [1] : vector<8x8xf32> to vector<8xf32>
    %45 = vector.shape_cast %44 : vector<8xf32> to vector<8x1xf32>
    %46 = tpu.reciprocal %45 {approx = true} : vector<8x1xf32> -> vector<8x1xf32>
    %47 = vector.broadcast %46 : vector<8x1xf32> to vector<8x8xf32>
    %48 = arith.mulf %43, %47 : vector<8x8xf32>
    %49 = arith.truncf %48 : vector<8x8xf32> to vector<8x8xbf16>
    %cst_21 = arith.constant dense<0.000000e+00> : vector<8x16xf32>
    %50 = tpu.matmul %49, %37, %cst_21 {dimension_numbers = #tpu.dot_dimension_numbers<[1], [0], [0], [1], [0, 0, 1, 1], [], []>} : vector<8x8xbf16>, vector<8x16xbf16>, vector<8x16xf32> -> vector<8x16xf32>
    %51 = arith.truncf %50 : vector<8x16xf32> to vector<8x16xbf16>
    %52 = tpu.concatenate %34, %51 in 1 : vector<8x16xbf16>, vector<8x16xbf16> -> vector<8x32xbf16>
    %c0_22 = arith.constant 0 : index
    %c0_23 = arith.constant 0 : index
    %53 = vector.load %arg8[%c0_22, %c0_23] : memref<32x32xbf16, #tpu.memory_space<vmem>>, vector<32x32xbf16>
    %cst_24 = arith.constant dense<0.000000e+00> : vector<8x32xf32>
    %54 = tpu.matmul %52, %53, %cst_24 {dimension_numbers = #tpu.dot_dimension_numbers<[1], [0], [0], [1], [0, 0, 1, 1], [], []>} : vector<8x32xbf16>, vector<32x32xbf16>, vector<8x32xf32> -> vector<8x32xf32>
    %c0_25 = arith.constant 0 : index
    %c0_26 = arith.constant 0 : index
    %55 = vector.load %arg9[%c0_25, %c0_26] : memref<1x32xf32, #tpu.memory_space<vmem>>, vector<1x32xf32>
    %56 = vector.broadcast %55 : vector<1x32xf32> to vector<8x32xf32>
    %57 = arith.addf %54, %56 : vector<8x32xf32>
    %58 = arith.addf %1, %57 : vector<8x32xf32>
    %cst_27 = arith.constant dense<0.000000e+00> : vector<8xf32>
    %59 = vector.multi_reduction <add>, %58, %cst_27 [1] : vector<8x32xf32> to vector<8xf32>
    %60 = vector.shape_cast %59 : vector<8xf32> to vector<8x1xf32>
    %cst_28 = arith.constant 3.200000e+01 : f32
    %61 = vector.broadcast %cst_28 : f32 to vector<8x1xf32>
    %62 = arith.divf %60, %61 : vector<8x1xf32>
    %63 = vector.broadcast %62 : vector<8x1xf32> to vector<8x32xf32>
    %64 = arith.subf %58, %63 : vector<8x32xf32>
    %65 = arith.mulf %64, %64 : vector<8x32xf32>
    %cst_29 = arith.constant dense<0.000000e+00> : vector<8xf32>
    %66 = vector.multi_reduction <add>, %65, %cst_29 [1] : vector<8x32xf32> to vector<8xf32>
    %67 = vector.shape_cast %66 : vector<8xf32> to vector<8x1xf32>
    %cst_30 = arith.constant 3.200000e+01 : f32
    %68 = vector.broadcast %cst_30 : f32 to vector<8x1xf32>
    %69 = arith.divf %67, %68 : vector<8x1xf32>
    %70 = vector.broadcast %62 : vector<8x1xf32> to vector<8x32xf32>
    %71 = arith.subf %58, %70 : vector<8x32xf32>
    %cst_31 = arith.constant 9.99999974E-6 : f32
    %72 = vector.broadcast %cst_31 : f32 to vector<8x1xf32>
    %73 = arith.addf %69, %72 : vector<8x1xf32>
    %74 = math.rsqrt %73 : vector<8x1xf32>
    %75 = vector.broadcast %74 : vector<8x1xf32> to vector<8x32xf32>
    %76 = arith.mulf %71, %75 : vector<8x32xf32>
    %c0_32 = arith.constant 0 : index
    %c0_33 = arith.constant 0 : index
    %77 = vector.load %arg10[%c0_32, %c0_33] : memref<1x32xf32, #tpu.memory_space<vmem>>, vector<1x32xf32>
    %78 = vector.broadcast %77 : vector<1x32xf32> to vector<8x32xf32>
    %79 = arith.mulf %76, %78 : vector<8x32xf32>
    %c0_34 = arith.constant 0 : index
    %c0_35 = arith.constant 0 : index
    %80 = vector.load %arg11[%c0_34, %c0_35] : memref<1x32xf32, #tpu.memory_space<vmem>>, vector<1x32xf32>
    %81 = vector.broadcast %80 : vector<1x32xf32> to vector<8x32xf32>
    %82 = arith.addf %79, %81 : vector<8x32xf32>
    %c0_36 = arith.constant 0 : index
    %c0_37 = arith.constant 0 : index
    %c0_38 = arith.constant 0 : index
    %83 = vector.load %arg12[%c0_36, %c0_37, %c0_38] : memref<1x8x32xf32, #tpu.memory_space<vmem>>, vector<1x8x32xf32>
    %84 = vector.shape_cast %83 : vector<1x8x32xf32> to vector<8x32xf32>
    %85 = vector.shape_cast %82 : vector<8x32xf32> to vector<1x8x32xf32>
    tpu.vector_store %arg12[%c0_36, %c0_37, %c0_38], %85 {strides = array<i32>} : memref<1x8x32xf32, #tpu.memory_space<vmem>>, vector<1x8x32xf32>,
    return
  }
  func.func @transform_0(%arg0: i32, %arg1: i32) -> (i32, i32, i32) {
    %c0_i32 = arith.constant 0 : i32
    %c0_i32_0 = arith.constant 0 : i32
    return %arg0, %arg1, %c0_i32 : i32, i32, i32
  }
  func.func @transform_1(%arg0: i32, %arg1: i32) -> (i32, i32, i32) {
    %c0_i32 = arith.constant 0 : i32
    %c0_i32_0 = arith.constant 0 : i32
    %c0_i32_1 = arith.constant 0 : i32
    return %arg0, %c0_i32, %c0_i32_0 : i32, i32, i32
  }
  func.func @transform_2(%arg0: i32, %arg1: i32) -> (i32, i32) {
    %c0_i32 = arith.constant 0 : i32
    %c0_i32_0 = arith.constant 0 : i32
    %c0_i32_1 = arith.constant 0 : i32
    return %c0_i32, %c0_i32_0 : i32, i32
  }
  func.func @transform_3(%arg0: i32, %arg1: i32) -> (i32, i32) {
    %c0_i32 = arith.constant 0 : i32
    %c0_i32_0 = arith.constant 0 : i32
    %c0_i32_1 = arith.constant 0 : i32
    return %c0_i32, %c0_i32_0 : i32, i32
  }
  func.func @transform_4(%arg0: i32, %arg1: i32) -> (i32, i32) {
    %c0_i32 = arith.constant 0 : i32
    %c0_i32_0 = arith.constant 0 : i32
    %c0_i32_1 = arith.constant 0 : i32
    return %c0_i32, %c0_i32_0 : i32, i32
  }
  func.func @transform_5(%arg0: i32, %arg1: i32) -> (i32, i32) {
    %c0_i32 = arith.constant 0 : i32
    %c0_i32_0 = arith.constant 0 : i32
    %c0_i32_1 = arith.constant 0 : i32
    return %c0_i32, %c0_i32_0 : i32, i32
  }
  func.func @transform_6(%arg0: i32, %arg1: i32) -> (i32, i32) {
    %c0_i32 = arith.constant 0 : i32
    %c0_i32_0 = arith.constant 0 : i32
    %c0_i32_1 = arith.constant 0 : i32
    return %c0_i32, %c0_i32_0 : i32, i32
  }
  func.func @transform_7(%arg0: i32, %arg1: i32) -> (i32, i32) {
    %c0_i32 = arith.constant 0 : i32
    %c0_i32_0 = arith.constant 0 : i32
    %c0_i32_1 = arith.constant 0 : i32
    return %c0_i32, %c0_i32_0 : i32, i32
  }
  func.func @transform_8(%arg0: i32, %arg1: i32) -> (i32, i32) {
    %c0_i32 = arith.constant 0 : i32
    %c0_i32_0 = arith.constant 0 : i32
    %c0_i32_1 = arith.constant 0 : i32
    return %c0_i32, %c0_i32_0 : i32, i32
  }
  func.func @transform_9(%arg0: i32, %arg1: i32) -> (i32, i32) {
    %c0_i32 = arith.constant 0 : i32
    %c0_i32_0 = arith.constant 0 : i32
    %c0_i32_1 = arith.constant 0 : i32
    return %c0_i32, %c0_i32_0 : i32, i32
  }
  func.func @transform_10(%arg0: i32, %arg1: i32) -> (i32, i32, i32) {
    %c0_i32 = arith.constant 0 : i32
    %c0_i32_0 = arith.constant 0 : i32
    return %arg0, %arg1, %c0_i32 : i32, i32, i32
  }
}

</mosaic_0001>

<bundles_post_ra>
// kernel: _lambda_.9
= control target key start
LH: loop header
LB: loop body
LE: loop exit
PB: predicated region body
PF: predicated region fallthrough
CT: control target
= control target key end

     0   :  { %12 = vsyncpa [#allocation3], 0  ;;  %s536_s0 = inlined_call_operand.vmem [shape: f32[16,32], index: 0, kind: input, shape index: {}]   ;;  %s537_s1 = inlined_call_operand.hbm [shape: bf16[32,128], index: 1, kind: input, shape index: {}]   ;;  %s538_s2 = inlined_call_operand.vmem [shape: f32[1,128], index: 2, kind: input, shape index: {}]   ;;  %s539_s3 = inlined_call_operand.hbm [shape: bf16[128,32], index: 3, kind: input, shape index: {}]   ;;  %s540_s4 = inlined_call_operand.vmem [shape: f32[1,32], index: 4, kind: input, shape index: {}, may-alias: {4,6}]   ;;  %s541_s5 = inlined_call_operand.vmem [shape: f32[1,32], index: 5, kind: input, shape index: {}]   ;;  %s542_s6 = inlined_call_operand.vmem [shape: f32[1,32], index: 6, kind: input, shape index: {}, may-alias: {4,6}]   ;;  %s543_s7 = inlined_call_operand.hbm [shape: f32[16,32], index: 7, kind: output, shape index: {}]  }
   0x1   :  { %13 = vsyncpa [#allocation6], 0 }
   0x2   :  { %14 = vsyncpa [#allocation4], 0  ;;  %s453_s24 = smov [#allocation2]  }
   0x3   :  { %s22_s25 = sshll.u32 %s453_s24, 4  ;;  %s23_s25 = int_to_ptr.vmem [resolvable:$true] %s22_s25 }
   0x4   :  { %s395_s26 = scalar_lea.vmem %s23_s25, 256  ;;  %p400_p1 = scmp.lt.s32.totalorder %s23_s25, %s23_s25 }
   0x5   :  { %p396_p0 = scmp.ne.s32.totalorder %s23_s25, %s395_s26  ;;  %p401_p2 = scmp.lt.s32.totalorder %s395_s26, %s395_s26 }
   0x7   :  { %p402_p3 = por %p401_p2, %p400_p1 }
   0x9   :  { %p403_p4 = pnand %p402_p3, %p396_p0 }
   0xb   :  { %406 = shalt.err (!%p403_p4)
}
   0xc   :  { %s454_s27 = smov 64   ;;  %s455_s28 = smov 4  }
   0xd   :  { %28 = dma.hbm_to_vmem [thread:$0]  %s537_s1, 256, %s23_s25, [#allocation3], %s454_s27, %s454_s27, %s455_s28  }
   0xe   :  { %s456_s8 = smov [#allocation5]  }
   0xf   :  { %s36_s9 = sshll.u32 %s456_s8, 4  ;;  %s37_s9 = int_to_ptr.vmem [resolvable:$true] %s36_s9 }
  0x10   :  { %s415_s10 = scalar_lea.vmem %s37_s9, 1024  ;;  %p420_p6 = scmp.lt.s32.totalorder %s37_s9, %s37_s9 }
  0x11   :  { %p416_p5 = scmp.ne.s32.totalorder %s37_s9, %s415_s10  ;;  %p421_p7 = scmp.lt.s32.totalorder %s415_s10, %s415_s10 }
  0x13   :  { %p422_p8 = por %p421_p7, %p420_p6 }
  0x15   :  { %p423_p9 = pnand %p422_p8, %p416_p5 }
  0x17   :  { %426 = shalt.err (!%p423_p9)
}
  0x18   :  { %42 = dma.hbm_to_vmem [thread:$0]  %s539_s3, 1024, %s37_s9, [#allocation6], %s454_s27, %s454_s27, %s455_s28  }
  0x19   :  { %447 = dma.done.wait [#allocation3], 256  }
  0x1a   :  { %448 = vsyncadd [#allocation3], 4294967040 }
  0x1b   :  { %449 = dma.done.wait [#allocation6], 1024  }
  0x1c   :  { %450 = vsyncadd [#allocation6], 4294966272  ;;  %v457_v0 = vmov 0.0   ;;  %vm458_vm0 = vmmov 0   ;;  %v373_v1 = vld [vmem:[#allocation2 + $0x8] sm:$0xff]   ;;  %v374_v2 = vld [vmem:[#allocation2] sm:$0xff]  }
  0x1d   :  { %336 = vmatprep.subr.bf16.mxu0 %v457_v0  ;;  %340 = vmatprep.mubr.msk.bf16.mxu0 %vm458_vm0, %v457_v0  ;;  %v56_v3 = vld [vmem:[%s536_s0] sm:$0xff]  ;;  %v57_v4 = vld [vmem:[%s536_s0 + $0x8] sm:$0xff]  ;;  %vm82_vm1 = vcmask 261120   ;;  %v377_v8 = vld [vmem:[#allocation5 + $0x28] sm:$0xff]   ;;  %s459_s20 = smov [#allocation7]  }
  0x1e   :  { %344 = vmatprep.subr.bf16.mxu1 %v457_v0  ;;  %360 = vmatprep.mubr.msk.bf16.mxu1 %vm458_vm0, %v457_v0  ;;  %v375_v5 = vld [vmem:[#allocation5 + $0x38] sm:$0xff]   ;;  %v58_v6 = vpack.c.bf16 %v57_v4, %v56_v3  ;;  %v376_v7 = vld [vmem:[#allocation5 + $0x30] sm:$0xff]   ;;  %v378_v9 = vld [vmem:[#allocation5 + $0x20] sm:$0xff]   ;;  %s296_s21 = sshll.u32 %s459_s20, 4  ;;  %s297_s21 = int_to_ptr.vmem [resolvable:$true] %s296_s21 }
  0x1f   :  { %337 = vmatpush3.bf16.msra.mxu0 %v373_v1  ;;  %345 = vmatpush3.bf16.msra.mxu1 %v375_v5  ;;  %v379_v10 = vld [vmem:[#allocation5 + $0x18] sm:$0xff]   ;;  %v380_v11 = vld [vmem:[#allocation5 + $0x10] sm:$0xff]   ;;  %v381_v12 = vld [vmem:[#allocation5 + $0x8] sm:$0xff]   ;;  %s427_s22 = scalar_lea.vmem %s297_s21, 256  ;;  %p432_p11 = scmp.lt.s32.totalorder %s297_s21, %s297_s21 }
  0x20   :  { %338 = vmatprep.subr.bf16.mxu0 %v457_v0  ;;  %346 = vmatprep.subr.bf16.mxu1 %v457_v0  ;;  %v382_v13 = vld [vmem:[#allocation5] sm:$0xff]   ;;  %v309_v14 = vld [vmem:[%s538_s2] ss:$0 sm:$0xff]  ;;  %p428_p10 = scmp.ne.s32.totalorder %s297_s21, %s427_s22  ;;  %p433_p12 = scmp.lt.s32.totalorder %s427_s22, %s427_s22 }
  0x21   :  { %v313_v24 = vld [vmem:[%s540_s4] ss:$0 sm:$0xff] }
  0x22   :  { %v322_v52 = vld [vmem:[%s541_s5] ss:$0 sm:$0xff]  ;;  %p434_p13 = por %p433_p12, %p432_p11 }
  0x23   :  { %339 = vmatpush3.bf16.msra.mxu0 %v374_v2  ;;  %347 = vmatpush3.bf16.msra.mxu1 %v376_v7  ;;  %v323_v54 = vld [vmem:[%s542_s6] ss:$0 sm:$0xff] }
  0x24   :  { %348 = vmatprep.subr.bf16.mxu1 %v457_v0  ;;  %p435_p0 = pnand %p434_p13, %p428_p10 }
  0x26   :  { %341 = vmatmul.mubr.msk.bf16.vlgmr.msra.gmra.mxu0 %vm82_vm1, %v58_v6 }
  0x27   :  { %349 = vmatpush3.bf16.msra.mxu1 %v377_v8 }
  0x28   :  { %350 = vmatprep.subr.bf16.mxu1 %v457_v0 }
  0x2b   :  { %351 = vmatpush3.bf16.msra.mxu1 %v378_v9 }
  0x2c   :  { %352 = vmatprep.subr.bf16.mxu1 %v457_v0 }
  0x2f   :  { %353 = vmatpush3.bf16.msra.mxu1 %v379_v10 }
  0x30   :  { %354 = vmatprep.subr.bf16.mxu1 %v457_v0 }
  0x33   :  { %355 = vmatpush3.bf16.msra.mxu1 %v380_v11 }
  0x34   :  { %356 = vmatprep.subr.bf16.mxu1 %v457_v0 }
  0x37   :  { %357 = vmatpush3.bf16.msra.mxu1 %v381_v12 }
  0x38   :  { %358 = vmatprep.subr.bf16.mxu1 %v457_v0 }
  0x3b   :  { %359 = vmatpush3.bf16.msra.mxu1 %v382_v13 }
  0xe6   :  { %v120_v15 = vpop.f32.mrf.mxu0 }
  0xe7   :  { %v121_v17 = vadd.f32 %v309_v14, %v120_v15 }
  0xe8   :  { %v342_v16 = vpop.f32.mrf.mxu0 }
  0xe9   :  { %v127_v21 = vmax.f32 %v121_v17, 0.0 }
  0xea   :  { %v123_v18 = vpop.f32.mrf.mxu0 }
  0xeb   :  { %v124_v19 = vadd.f32 %v309_v14, %v123_v18 }
  0xec   :  { %v343_v20 = vpop.f32.mrf.mxu0 }
  0xed   :  { %v128_v22 = vmax.f32 %v124_v19, 0.0 }
  0xef   :  { %v129_v23 = vpack.c.bf16 %v128_v22, %v127_v21 }
  0xf1   :  { %361 = vmatmul.mubr.bf16.vlgmr.msra.gmra.mxu1 %v129_v23 }
 0x1b1   :  { %v235_v25 = vpop.f32.mrf.mxu1 }
 0x1b2   :  { %v236_v26 = vadd.f32 %v313_v24, %v235_v25 }
 0x1b3   :  { %v362_v27 = vpop.f32.mrf.mxu1 }
 0x1b4   :  { %v242_v28 = vadd.f32 %v236_v26, %v56_v3 }
 0x1b5   :  { %v238_v29 = vpop.f32.mrf.mxu1 }
 0x1b6   :  { %v239_v30 = vadd.f32 %v313_v24, %v238_v29  ;;  %v244_v31 = vsel %vm82_vm1, %v242_v28, 0.0 }
 0x1b7   :  { %245 = vadd.xlane.f32.xlu0 %v244_v31  ;;  %v363_v32 = vpop.f32.mrf.mxu1 }
 0x1b8   :  { %v243_v33 = vadd.f32 %v239_v30, %v57_v4 }
 0x1ba   :  { %v247_v34 = vsel %vm82_vm1, %v243_v33, 0.0 }
 0x1bb   :  { %248 = vadd.xlane.f32.xlu0 %v247_v34 }
 0x240   :  { %v246_v35 = vpop.xlane.xlu0 %245 }
 0x241   :  { %v251_v36 = vmul.f32 0.03125, %v246_v35 }
 0x243   :  { %v253_v37 = vsub.f32 %v242_v28, %v251_v36 }
 0x244   :  { %v249_v38 = vpop.xlane.xlu0 %248 }
 0x245   :  { %v252_v39 = vmul.f32 0.03125, %v249_v38  ;;  %v255_v40 = vmul.f32 %v253_v37, %v253_v37 }
 0x247   :  { %v254_v41 = vsub.f32 %v243_v33, %v252_v39  ;;  %v257_v42 = vsel %vm82_vm1, %v255_v40, 0.0 }
 0x248   :  { %258 = vadd.xlane.f32.xlu1 %v257_v42 }
 0x249   :  { %v256_v43 = vmul.f32 %v254_v41, %v254_v41 }
 0x24b   :  { %v260_v44 = vsel %vm82_vm1, %v256_v43, 0.0 }
 0x24c   :  { %261 = vadd.xlane.f32.xlu1 %v260_v44 }
 0x2d1   :  { %v259_v45 = vpop.xlane.xlu1 %258 }
 0x2d2   :  { %v263_v46 = vmul.f32 0.03125, %v259_v45 }
 0x2d4   :  { %v265_v47 = vadd.f32 1e-05, %v263_v46 }
 0x2d5   :  { %v262_v48 = vpop.xlane.xlu1 %261 }
 0x2d6   :  { %383 = vrsqrt.f32 %v265_v47  ;;  %v264_v49 = vmul.f32 0.03125, %v262_v48 }
 0x2d8   :  { %v266_v50 = vadd.f32 1e-05, %v264_v49 }
 0x2da   :  { %385 = vrsqrt.f32 %v266_v50 }
 0x2e3   :  { %v384_v51 = vpop.eup %383 }
 0x2e4   :  { %v269_v53 = vmul.f32 %v384_v51, %v253_v37 }
 0x2e6   :  { %v278_v55 = vmul.f32 %v322_v52, %v269_v53 }
 0x2e7   :  { %v386_v56 = vpop.eup %385 }
 0x2e8   :  { %v270_v57 = vmul.f32 %v386_v56, %v254_v41  ;;  %v287_v58 = vadd.f32 %v323_v54, %v278_v55 }
 0x2ea   :  { %v279_v59 = vmul.f32 %v322_v52, %v270_v57  ;;  %289 = vst.msk [vmem:[#allocation7] sm:$0xff] %vm82_vm1, %v287_v58 }
 0x2ec   :  { %v288_v60 = vadd.f32 %v323_v54, %v279_v59 }
 0x2ee   :  { %290 = vst.msk [vmem:[#allocation7 + $0x8] sm:$0xff] %vm82_vm1, %v288_v60 }
 0x2ef   :  { %438 = shalt.err (!%p435_p0)
}
 0x2f0   :  { %s460_s5 = smov 128   ;;  %s461_s6 = smov 8  }
 0x2f1   :  { %302 = dma.vmem_to_hbm [thread:$0]  %s297_s21, 256, %s543_s7, [#allocation4], %s460_s5, %s460_s5, %s461_s6  }
 0x2f2   :  { %451 = dma.done.wait [#allocation4], 256  }
 0x2f3   :  { %452 = vsyncadd [#allocation4], 4294967040 }
 0x2f4   :  { %306 = vsyncpa [#allocation3], 1 }
 0x2f5   :  { %307 = vsyncpa [#allocation6], 1 }
 0x2f6   :  { %308 = vsyncpa [#allocation4], 1 }

// kernel: _lambda_.7
= control target key start
LH: loop header
LB: loop body
LE: loop exit
PB: predicated region body
PF: predicated region fallthrough
CT: control target
= control target key end

     0   :  { %12 = vsyncpa [#allocation3], 0  ;;  %s498_s0 = inlined_call_operand.vmem [shape: f32[16,32], index: 0, kind: input, shape index: {}]   ;;  %s499_s1 = inlined_call_operand.hbm [shape: bf16[32,128], index: 1, kind: input, shape index: {}]   ;;  %s500_s2 = inlined_call_operand.vmem [shape: f32[1,128], index: 2, kind: input, shape index: {}]   ;;  %s501_s3 = inlined_call_operand.hbm [shape: bf16[128,32], index: 3, kind: input, shape index: {}]   ;;  %s502_s4 = inlined_call_operand.vmem [shape: f32[1,32], index: 4, kind: input, shape index: {}, may-alias: {4,6}]   ;;  %s503_s5 = inlined_call_operand.vmem [shape: f32[1,32], index: 5, kind: input, shape index: {}]   ;;  %s504_s6 = inlined_call_operand.vmem [shape: f32[1,32], index: 6, kind: input, shape index: {}, may-alias: {4,6}]   ;;  %s505_s7 = inlined_call_operand.vmem [shape: f32[16,32], index: 7, kind: output, shape index: {}]  }
   0x1   :  { %13 = vsyncpa [#allocation5], 0  ;;  %s415_s24 = smov [#allocation2]  }
   0x2   :  { %s21_s25 = sshll.u32 %s415_s24, 4  ;;  %s22_s25 = int_to_ptr.vmem [resolvable:$true] %s21_s25 }
   0x3   :  { %s379_s26 = scalar_lea.vmem %s22_s25, 256  ;;  %p384_p1 = scmp.lt.s32.totalorder %s22_s25, %s22_s25 }
   0x4   :  { %p380_p0 = scmp.ne.s32.totalorder %s22_s25, %s379_s26  ;;  %p385_p2 = scmp.lt.s32.totalorder %s379_s26, %s379_s26 }
   0x6   :  { %p386_p3 = por %p385_p2, %p384_p1 }
   0x8   :  { %p387_p4 = pnand %p386_p3, %p380_p0 }
   0xa   :  { %390 = shalt.err (!%p387_p4)
}
   0xb   :  { %s416_s27 = smov 64   ;;  %s417_s28 = smov 4  }
   0xc   :  { %27 = dma.hbm_to_vmem [thread:$0]  %s499_s1, 256, %s22_s25, [#allocation3], %s416_s27, %s416_s27, %s417_s28  }
   0xd   :  { %s418_s8 = smov [#allocation4]  }
   0xe   :  { %s35_s9 = sshll.u32 %s418_s8, 4  ;;  %s36_s9 = int_to_ptr.vmem [resolvable:$true] %s35_s9 }
   0xf   :  { %s399_s10 = scalar_lea.vmem %s36_s9, 1024  ;;  %p404_p6 = scmp.lt.s32.totalorder %s36_s9, %s36_s9 }
  0x10   :  { %p400_p5 = scmp.ne.s32.totalorder %s36_s9, %s399_s10  ;;  %p405_p7 = scmp.lt.s32.totalorder %s399_s10, %s399_s10 }
  0x12   :  { %p406_p8 = por %p405_p7, %p404_p6 }
  0x14   :  { %p407_p9 = pnand %p406_p8, %p400_p5 }
  0x16   :  { %410 = shalt.err (!%p407_p9)
}
  0x17   :  { %41 = dma.hbm_to_vmem [thread:$0]  %s501_s3, 1024, %s36_s9, [#allocation5], %s416_s27, %s416_s27, %s417_s28  }
  0x18   :  { %411 = dma.done.wait [#allocation3], 256  }
  0x19   :  { %412 = vsyncadd [#allocation3], 4294967040 }
  0x1a   :  { %413 = dma.done.wait [#allocation5], 1024  }
  0x1b   :  { %414 = vsyncadd [#allocation5], 4294966272  ;;  %v419_v0 = vmov 0.0   ;;  %vm420_vm0 = vmmov 0   ;;  %v357_v1 = vld [vmem:[#allocation2 + $0x8] sm:$0xff]   ;;  %v358_v2 = vld [vmem:[#allocation2] sm:$0xff]  }
  0x1c   :  { %323 = vmatprep.subr.bf16.mxu0 %v419_v0  ;;  %327 = vmatprep.mubr.msk.bf16.mxu0 %vm420_vm0, %v419_v0  ;;  %v55_v3 = vld [vmem:[%s498_s0] sm:$0xff]  ;;  %v56_v4 = vld [vmem:[%s498_s0 + $0x8] sm:$0xff]  ;;  %vm81_vm1 = vcmask 261120   ;;  %v361_v8 = vld [vmem:[#allocation4 + $0x28] sm:$0xff]  }
  0x1d   :  { %331 = vmatprep.subr.bf16.mxu1 %v419_v0  ;;  %347 = vmatprep.mubr.msk.bf16.mxu1 %vm420_vm0, %v419_v0  ;;  %v359_v5 = vld [vmem:[#allocation4 + $0x38] sm:$0xff]   ;;  %v57_v6 = vpack.c.bf16 %v56_v4, %v55_v3  ;;  %v360_v7 = vld [vmem:[#allocation4 + $0x30] sm:$0xff]   ;;  %v362_v9 = vld [vmem:[#allocation4 + $0x20] sm:$0xff]  }
  0x1e   :  { %324 = vmatpush3.bf16.msra.mxu0 %v357_v1  ;;  %332 = vmatpush3.bf16.msra.mxu1 %v359_v5  ;;  %v363_v10 = vld [vmem:[#allocation4 + $0x18] sm:$0xff]   ;;  %v364_v11 = vld [vmem:[#allocation4 + $0x10] sm:$0xff]   ;;  %v365_v12 = vld [vmem:[#allocation4 + $0x8] sm:$0xff]  }
  0x1f   :  { %325 = vmatprep.subr.bf16.mxu0 %v419_v0  ;;  %333 = vmatprep.subr.bf16.mxu1 %v419_v0  ;;  %v366_v13 = vld [vmem:[#allocation4] sm:$0xff]   ;;  %v296_v14 = vld [vmem:[%s500_s2] ss:$0 sm:$0xff] }
  0x20   :  { %v300_v24 = vld [vmem:[%s502_s4] ss:$0 sm:$0xff] }
  0x21   :  { %v309_v52 = vld [vmem:[%s503_s5] ss:$0 sm:$0xff] }
  0x22   :  { %326 = vmatpush3.bf16.msra.mxu0 %v358_v2  ;;  %334 = vmatpush3.bf16.msra.mxu1 %v360_v7  ;;  %v310_v54 = vld [vmem:[%s504_s6] ss:$0 sm:$0xff] }
  0x23   :  { %335 = vmatprep.subr.bf16.mxu1 %v419_v0 }
  0x25   :  { %328 = vmatmul.mubr.msk.bf16.vlgmr.msra.gmra.mxu0 %vm81_vm1, %v57_v6 }
  0x26   :  { %336 = vmatpush3.bf16.msra.mxu1 %v361_v8 }
  0x27   :  { %337 = vmatprep.subr.bf16.mxu1 %v419_v0 }
  0x2a   :  { %338 = vmatpush3.bf16.msra.mxu1 %v362_v9 }
  0x2b   :  { %339 = vmatprep.subr.bf16.mxu1 %v419_v0 }
  0x2e   :  { %340 = vmatpush3.bf16.msra.mxu1 %v363_v10 }
  0x2f   :  { %341 = vmatprep.subr.bf16.mxu1 %v419_v0 }
  0x32   :  { %342 = vmatpush3.bf16.msra.mxu1 %v364_v11 }
  0x33   :  { %343 = vmatprep.subr.bf16.mxu1 %v419_v0 }
  0x36   :  { %344 = vmatpush3.bf16.msra.mxu1 %v365_v12 }
  0x37   :  { %345 = vmatprep.subr.bf16.mxu1 %v419_v0 }
  0x3a   :  { %346 = vmatpush3.bf16.msra.mxu1 %v366_v13 }
  0xe5   :  { %v119_v15 = vpop.f32.mrf.mxu0 }
  0xe6   :  { %v120_v17 = vadd.f32 %v296_v14, %v119_v15 }
  0xe7   :  { %v329_v16 = vpop.f32.mrf.mxu0 }
  0xe8   :  { %v126_v21 = vmax.f32 %v120_v17, 0.0 }
  0xe9   :  { %v122_v18 = vpop.f32.mrf.mxu0 }
  0xea   :  { %v123_v19 = vadd.f32 %v296_v14, %v122_v18 }
  0xeb   :  { %v330_v20 = vpop.f32.mrf.mxu0 }
  0xec   :  { %v127_v22 = vmax.f32 %v123_v19, 0.0 }
  0xee   :  { %v128_v23 = vpack.c.bf16 %v127_v22, %v126_v21 }
  0xf0   :  { %348 = vmatmul.mubr.bf16.vlgmr.msra.gmra.mxu1 %v128_v23 }
 0x1b0   :  { %v234_v25 = vpop.f32.mrf.mxu1 }
 0x1b1   :  { %v235_v26 = vadd.f32 %v300_v24, %v234_v25 }
 0x1b2   :  { %v349_v27 = vpop.f32.mrf.mxu1 }
 0x1b3   :  { %v241_v28 = vadd.f32 %v235_v26, %v55_v3 }
 0x1b4   :  { %v237_v29 = vpop.f32.mrf.mxu1 }
 0x1b5   :  { %v238_v30 = vadd.f32 %v300_v24, %v237_v29  ;;  %v243_v31 = vsel %vm81_vm1, %v241_v28, 0.0 }
 0x1b6   :  { %244 = vadd.xlane.f32.xlu0 %v243_v31  ;;  %v350_v32 = vpop.f32.mrf.mxu1 }
 0x1b7   :  { %v242_v33 = vadd.f32 %v238_v30, %v56_v4 }
 0x1b9   :  { %v246_v34 = vsel %vm81_vm1, %v242_v33, 0.0 }
 0x1ba   :  { %247 = vadd.xlane.f32.xlu0 %v246_v34 }
 0x23f   :  { %v245_v35 = vpop.xlane.xlu0 %244 }
 0x240   :  { %v250_v36 = vmul.f32 0.03125, %v245_v35 }
 0x242   :  { %v252_v37 = vsub.f32 %v241_v28, %v250_v36 }
 0x243   :  { %v248_v38 = vpop.xlane.xlu0 %247 }
 0x244   :  { %v251_v39 = vmul.f32 0.03125, %v248_v38  ;;  %v254_v40 = vmul.f32 %v252_v37, %v252_v37 }
 0x246   :  { %v253_v41 = vsub.f32 %v242_v33, %v251_v39  ;;  %v256_v42 = vsel %vm81_vm1, %v254_v40, 0.0 }
 0x247   :  { %257 = vadd.xlane.f32.xlu1 %v256_v42 }
 0x248   :  { %v255_v43 = vmul.f32 %v253_v41, %v253_v41 }
 0x24a   :  { %v259_v44 = vsel %vm81_vm1, %v255_v43, 0.0 }
 0x24b   :  { %260 = vadd.xlane.f32.xlu1 %v259_v44 }
 0x2d0   :  { %v258_v45 = vpop.xlane.xlu1 %257 }
 0x2d1   :  { %v262_v46 = vmul.f32 0.03125, %v258_v45 }
 0x2d3   :  { %v264_v47 = vadd.f32 1e-05, %v262_v46 }
 0x2d4   :  { %v261_v48 = vpop.xlane.xlu1 %260 }
 0x2d5   :  { %367 = vrsqrt.f32 %v264_v47  ;;  %v263_v49 = vmul.f32 0.03125, %v261_v48 }
 0x2d7   :  { %v265_v50 = vadd.f32 1e-05, %v263_v49 }
 0x2d9   :  { %369 = vrsqrt.f32 %v265_v50 }
 0x2e2   :  { %v368_v51 = vpop.eup %367 }
 0x2e3   :  { %v268_v53 = vmul.f32 %v368_v51, %v252_v37 }
 0x2e5   :  { %v277_v55 = vmul.f32 %v309_v52, %v268_v53 }
 0x2e6   :  { %v370_v56 = vpop.eup %369 }
 0x2e7   :  { %v286_v57 = vadd.f32 %v310_v54, %v277_v55  ;;  %v269_v58 = vmul.f32 %v370_v56, %v253_v41 }
 0x2e9   :  { %288 = vst.msk [vmem:[%s505_s7] sm:$0xff] %vm81_vm1, %v286_v57  ;;  %v278_v59 = vmul.f32 %v309_v52, %v269_v58 }
 0x2eb   :  { %v287_v60 = vadd.f32 %v310_v54, %v278_v59 }
 0x2ed   :  { %289 = vst.msk [vmem:[%s505_s7 + $0x8] sm:$0xff] %vm81_vm1, %v287_v60 }
 0x2ee   :  { %294 = vsyncpa [#allocation3], 1 }
 0x2ef   :  { %295 = vsyncpa [#allocation5], 1 }

// kernel: _lambda_.5
= control target key start
LH: loop header
LB: loop body
LE: loop exit
PB: predicated region body
PF: predicated region fallthrough
CT: control target
= control target key end

     0   :  { %11 = vsyncpa [#allocation3], 0  ;;  %s1420_s0 = inlined_call_operand.vmem [shape: f32[2,8,32], index: 0, kind: input, shape index: {}]   ;;  %s1421_s1 = inlined_call_operand.hbm [shape: bf16[3,160,32], index: 1, kind: input, shape index: {}]   ;;  %s1422_s2 = inlined_call_operand.vmem [shape: f32[3,1,32], index: 2, kind: input, shape index: {}]   ;;  %s1423_s3 = inlined_call_operand.vmem [shape: f32[3,1,32], index: 3, kind: input, shape index: {}]   ;;  %s1424_s4 = inlined_call_operand.hbm [shape: bf16[32,32], index: 4, kind: input, shape index: {}]   ;;  %s1425_s5 = inlined_call_operand.vmem [shape: f32[2,8,32], index: 5, kind: input, shape index: {}]   ;;  %s1426_s6 = inlined_call_operand.vmem [shape: f32[2,8,32], index: 6, kind: output, shape index: {}]  }
   0x1   :  { %12 = vsyncpa [#allocation5], 0  ;;  %s1243_s21 = smov 0  }
   0x2 LB: > { %s1249_s22 = sadd.s32 4294967295, %s1196_s21   ;;  %p992_p0 = scmp.ge.s32.totalorder %s1196_s21, 1  ;;  %s1196_s21 = sphi %s1243_s21, %s18_s21  }
   0x3   : > { %p185_p1 = scmp.lt.s32.totalorder %s1196_s21, 3  ;;  %s1198_s23 = smov [#allocation2]  }
   0x4   : > { %s197_s24 = sshll.u32 %s1198_s23, 4  ;;  %p1076_p3 = scmp.eq.s32.totalorder %s1249_s22, 0  ;;  %s198_s24 = int_to_ptr.vmem [resolvable:$true] %s197_s24 }
   0x5   : > { %p1253_p2 = pnand %p992_p0, %p185_p1  ;;  %s1199_s26 = smov [#allocation4]  }
   0x6   : > { %s216_s27 = sshll.u32 %s1199_s26, 4  ;;  %s1141_s29 = scalar_lea.vmem %s198_s24, 3840  ;;  %s217_s27 = int_to_ptr.vmem [resolvable:$true] %s216_s27 }
   0x7   : > { %p1069_p4 = pneg %p1253_p2  ;;  %p1142_p7 = scmp.ne.s32.totalorder %s198_s24, %s1141_s29 }
   0x8   : > { %p1149_p10 = scmp.lt.s32.totalorder %s198_s24, %s198_s24  ;;  %p1150_p11 = scmp.lt.s32.totalorder %s1141_s29, %s1141_s29 }
   0x9   : > { %p1262_p5 = pnand %p1076_p3, %p1069_p4 }
   0xa   : > { %p1151_p12 = por %p1150_p11, %p1149_p10 }
   0xb   : > { %p1132_p6 = pneg %p1262_p5 }
   0xd   : > { %p1144_p8 = pnand %p1142_p7, %p1132_p6 }
   0xf   : > { %p1145_p9 = pneg %p1144_p8 }
  0x11   : > { %p1152_p13 = pnand %p1151_p12, %p1145_p9 }
  0x13   : > { %1155 = shalt.err (!%p1152_p13)
}
  0x14   : > { %s1200_s30 = smov 64   ;;  %s1201_s7 = smov 4  }
  0x15   : > { %1072 = dma.hbm_to_vmem [thread:$0]  (!%p1262_p5), %s1421_s1, 3840, %s198_s24, [#allocation3], %s1200_s30, %s1200_s30, %s1201_s7  }
  0x16   : > { %s1167_s10 = scalar_lea.vmem %s217_s27, 256  ;;  %p1175_p7 = scmp.lt.s32.totalorder %s217_s27, %s217_s27 }
  0x17   : > { %p1168_p0 = scmp.ne.s32.totalorder %s217_s27, %s1167_s10  ;;  %p1176_p8 = scmp.lt.s32.totalorder %s1167_s10, %s1167_s10 }
  0x19   : > { %p1170_p1 = pnand %p1168_p0, %p1132_p6  ;;  %p1177_p10 = por %p1176_p8, %p1175_p7 }
  0x1b   : > { %p1171_p4 = pneg %p1170_p1 }
  0x1d   : > { %p1178_p9 = pnand %p1177_p10, %p1171_p4 }
  0x1f   : > { %1181 = shalt.err (!%p1178_p9)
}
  0x20   : > { %1075 = dma.hbm_to_vmem [thread:$0]  (!%p1262_p5), %s1424_s4, 256, %s217_s27, [#allocation5], %s1200_s30, %s1200_s30, %s1201_s7  }
  0x21   : > { %246 = sbr.rel (%p1253_p2) target bundleno = 1221 (0x4c5), region = 44 }
  0x26   : > { %1187 = dma.done.wait (%p1076_p3), [#allocation3], 3840  }
  0x27   : > { %1189 = vsyncadd (%p1076_p3), [#allocation3], 4294963456 }
  0x28   : > { %1191 = dma.done.wait (%p1076_p3), [#allocation5], 256  }
  0x29   : > { %1193 = vsyncadd (%p1076_p3), [#allocation5], 4294967040  ;;  %p282_p6 = scmp.lt.s32.totalorder %s1249_s22, 1  ;;  %v296_v0 = vlaneseq  ;;  %v1202_v1 = vmov 0   ;;  %v1098_v8 = vld [vmem:[#allocation2 + $0x38] sm:$0xff]   ;;  %v1099_v12 = vld [vmem:[#allocation2 + $0x30] sm:$0xff]  }
  0x2a   : > { %438 = vmatprep.subr.bf16.mxu0 %v1202_v1  ;;  %609 = vmatprep.subr.bf16.mxu1 %v1202_v1  ;;  %s1203_s17 = smov 32   ;;  %s1204_s18 = smov 96   ;;  %v1100_v17 = vld [vmem:[#allocation2 + $0x28] sm:$0xff]   ;;  %v1101_v20 = vld [vmem:[#allocation2 + $0x20] sm:$0xff]   ;;  %vm344_vm3 = vcmask 261120   ;;  %v1102_v21 = vld [vmem:[#allocation2 + $0x18] sm:$0xff]  }
  0x2b   : > { %s1430_s22 = smov (!%p282_p6, %s1249_s22), 1  ;;  %v297_v2 = vshrl.u32 %v296_v0, 7  ;;  %439 = vmatpush1.bf16.msra.mxu0 %v1098_v8  ;;  %s1205_s19 = smov 64   ;;  %v1103_v22 = vld [vmem:[#allocation2 + $0x10] sm:$0xff]   ;;  %v1104_v23 = vld [vmem:[#allocation2 + $0x8] sm:$0xff]   ;;  %v1105_v24 = vld [vmem:[#allocation2] sm:$0xff]  }
  0x2c   : > { %s1298_s13 = sshll.u32 %s1430_s22, 3  ;;  %440 = vmatprep.subr.bf16.mxu0 %v1202_v1  ;;  %v1106_v25 = vld [vmem:[#allocation2 + $0x48] sm:$0xff]   ;;  %v1107_v26 = vld [vmem:[#allocation2 + $0x40] sm:$0xff]   ;;  %vm348_vm5 = vcmask 523264   ;;  %vm351_vm6 = vcmask 785408   ;;  %v1110_v39 = vld [vmem:[#allocation2 + $0x78] sm:$0xff]  }
  0x2d   : > { %v1300_v3 = vadd.s32 4294967295, %v297_v2  ;;  %v1302_v4 = vadd.s32 1, %v297_v2  ;;  %s285_s16 = scalar_lea.vmem %s1420_s0, %s1298_s13  ;;  %v1310_v9 = vadd.s32 2, %v297_v2  ;;  %v1333_v27 = vadd.s32 4294967294, %v297_v2  ;;  %v1108_v37 = vld [vmem:[#allocation2 + $0x88] sm:$0xff]   ;;  %v1109_v38 = vld [vmem:[#allocation2 + $0x80] sm:$0xff]   ;;  %s289_s11 = scalar_lea.vmem %s1425_s5, %s1298_s13 }
  0x2e   : > { %v295_v5 = vld [vmem:[%s285_s16] sm:$0xff]  ;;  %610 = vmatpush1.bf16.msra.mxu1 %v1108_v37  ;;  %v1111_v40 = vld [vmem:[#allocation2 + $0x70] sm:$0xff]   ;;  %v1112_v41 = vld [vmem:[#allocation2 + $0x68] sm:$0xff]   ;;  %vm1207_vm7 = vmmov 0   ;;  %s293_s15 = scalar_lea.vmem %s1426_s6, %s1298_s13 }
  0x2f   : > { %vm303_vm0 = vcmp.ge.s32.totalorder %v1300_v3, 0  ;;  %vm308_vm1 = vcmp.lt.s32.totalorder %v1302_v4, 8  ;;  %v319_v6 = vrot.slane %v295_v5, 7  ;;  %v325_v7 = vrot.slane %v295_v5, 1  ;;  %441 = vmatpush1.bf16.msra.mxu0 %v1099_v12  ;;  %611 = vmatprep.subr.bf16.mxu1 %v1202_v1  ;;  %v1113_v42 = vld [vmem:[#allocation2 + $0x60] sm:$0xff]   ;;  %v1114_v43 = vld [vmem:[#allocation2 + $0x58] sm:$0xff]  }
  0x30   : > { %vm312_vm2 = vcmp.lt.s32.totalorder %v1310_v9, 8  ;;  %v324_v15 = vpack.c.bf16 %v295_v5, %v295_v5  ;;  %v330_v16 = vrot.slane %v295_v5, 2  ;;  %442 = vmatprep.subr.bf16.mxu0 %v1202_v1  ;;  %v314_v28 = vrot.slane %v295_v5, 6  ;;  %v1115_v44 = vld [vmem:[#allocation2 + $0x50] sm:$0xff]   ;;  %v1116_v45 = vld [vmem:[#allocation2 + $0x98] sm:$0xff]  }
  0x31   : > { %v322_v10 = vsel %vm303_vm0, %v319_v6, 0.0  ;;  %v328_v11 = vsel %vm308_vm1, %v325_v7, 0.0  ;;  %vm299_vm4 = vcmp.ge.s32.totalorder %v1333_v27, 0  ;;  %v1013_v46 = vld [vmem:[%s1422_s2] ss:$0 sm:$0xff]  ;;  %v1117_v47 = vld [vmem:[#allocation2 + $0x90] sm:$0xff]  }
  0x32   : > { %v323_v13 = vpack.c.bf16 %v322_v10, %v322_v10  ;;  %v329_v14 = vpack.c.bf16 %v328_v11, %v328_v11  ;;  %v333_v18 = vsel %vm312_vm2, %v330_v16, 0.0  ;;  %v317_v29 = vsel %vm299_vm4, %v314_v28, 0.0  ;;  %612 = vmatpush1.bf16.msra.mxu1 %v1109_v38  ;;  %v1014_v49 = vld [vmem:[%s1423_s3] ss:$0 sm:$0xff]  ;;  %v1119_v16 = vld [vmem:[#allocation2 + $0xd0] sm:$0xff]  }
  0x33   : > { %v334_v19 = vpack.c.bf16 %v333_v18, %v333_v18  ;;  %443 = vmatpush1.bf16.msra.mxu0 %v1100_v17  ;;  %v318_v31 = vpack.c.bf16 %v317_v29, %v317_v29  ;;  %613 = vmatprep.subr.bf16.mxu1 %v1202_v1  ;;  %v1120_v17 = vld [vmem:[#allocation2 + $0xc8] sm:$0xff]   ;;  %v1121_v18 = vld [vmem:[#allocation2 + $0xc0] sm:$0xff]  }
  0x34   : > { %336 = vrot.lane.b32.xlu0 %v323_v13, %s1203_s17  ;;  %342 = vrot.lane.b32.xlu1 %v329_v14, %s1204_s18  ;;  %v1029_v28 = vld [vmem:[%s1423_s3 + $0x1] ss:$0 sm:$0xff]  ;;  %v1042_v27 = vld [vmem:[%s1422_s2 + $0x2] ss:$0 sm:$0xff] }
  0x35   : > { %1012 = vmatprep.mubr.msk.bf16.mxu0 %vm344_vm3, %v334_v19  ;;  %444 = vmatprep.subr.bf16.mxu0 %v1202_v1  ;;  %v1122_v19 = vld [vmem:[#allocation2 + $0xb8] sm:$0xff]  }
  0x36   : > { %614 = vmatpush1.bf16.msra.mxu1 %v1110_v39 }
  0x37   : > { %445 = vmatpush1.bf16.msra.mxu0 %v1101_v20  ;;  %615 = vmatprep.subr.bf16.mxu1 %v1202_v1  ;;  %v1123_v20 = vld [vmem:[#allocation2 + $0xb0] sm:$0xff]  }
  0x38   : > { %339 = vrot.lane.b32.xlu0 %v324_v15, %s1205_s19  ;;  %446 = vmatprep.subr.bf16.mxu0 %v1202_v1  ;;  %v1118_v15 = vld [vmem:[#allocation2 + $0xd8] sm:$0xff]  }
  0x3a   : > { %616 = vmatpush1.bf16.msra.mxu1 %v1111_v40 }
  0x3b   : > { %447 = vmatpush1.bf16.msra.mxu0 %v1102_v21  ;;  %617 = vmatprep.subr.bf16.mxu1 %v1202_v1  ;;  %v1124_v21 = vld [vmem:[#allocation2 + $0xa8] sm:$0xff]  }
  0x3c   : > { %448 = vmatprep.subr.bf16.mxu0 %v1202_v1 }
  0x3e   : > { %618 = vmatpush1.bf16.msra.mxu1 %v1112_v41 }
  0x3f   : > { %449 = vmatpush1.bf16.msra.mxu0 %v1103_v22  ;;  %619 = vmatprep.subr.bf16.mxu1 %v1202_v1  ;;  %v1125_v22 = vld [vmem:[#allocation2 + $0xa0] sm:$0xff]  }
  0x40   : > { %450 = vmatprep.subr.bf16.mxu0 %v1202_v1 }
  0x42   : > { %620 = vmatpush1.bf16.msra.mxu1 %v1113_v42 }
  0x43   : > { %451 = vmatpush1.bf16.msra.mxu0 %v1104_v23  ;;  %621 = vmatprep.subr.bf16.mxu1 %v1202_v1  ;;  %v1126_v23 = vld [vmem:[#allocation2 + $0xe8] sm:$0xff]  }
  0x44   : > { %452 = vmatprep.subr.bf16.mxu0 %v1202_v1 }
  0x46   : > { %622 = vmatpush1.bf16.msra.mxu1 %v1114_v43 }
  0x47   : > { %453 = vmatpush1.bf16.msra.mxu0 %v1105_v24  ;;  %623 = vmatprep.subr.bf16.mxu1 %v1202_v1  ;;  %v1027_v24 = vld [vmem:[%s1422_s2 + $0x1] ss:$0 sm:$0xff] }
  0x48   : > { %466 = vmatprep.subr.bf16.mxu0 %v1202_v1 }
  0x4a   : > { %624 = vmatpush1.bf16.msra.mxu1 %v1115_v44 }
  0x4b   : > { %467 = vmatpush2.bf16.msra.mxu0 %v1106_v25  ;;  %637 = vmatprep.subr.bf16.mxu1 %v1202_v1  ;;  %v1127_v25 = vld [vmem:[#allocation2 + $0xe0] sm:$0xff]  }
  0x4c   : > { %468 = vmatprep.subr.bf16.mxu0 %v1202_v1 }
  0x4e   : > { %638 = vmatpush2.bf16.msra.mxu1 %v1116_v45 }
  0x4f   : > { %469 = vmatpush2.bf16.msra.mxu0 %v1107_v26  ;;  %639 = vmatprep.subr.bf16.mxu1 %v1202_v1 }
  0x50   : > { %782 = vmatprep.subr.bf16.mxu0 %v1202_v1 }
  0x52   : > { %640 = vmatpush2.bf16.msra.mxu1 %v1117_v47 }
  0xa6   : > { %v337_v30 = vpop.permute.xlu0 %336  ;;  %v343_v32 = vpop.permute.xlu1 %342 }
  0xa7   : > { %v347_v33 = vsel %vm344_vm3, %v318_v31, %v337_v30 }
  0xaa   : > { %v340_v34 = vpop.permute.xlu0 %339 }
  0xab   : > { %v350_v35 = vsel %vm348_vm5, %v347_v33, %v340_v34 }
  0xac   : > { %v353_v36 = vsel %vm351_vm6, %v350_v35, %v343_v32 }
  0xad   : > { %471 = vmatmul.mubr.bf16.vlgmr.msra.gmra.mxu0 %v353_v36 }
  0xae   : > { %783 = vmatpush1.bf16.msra.mxu0 %v1118_v15 }
  0xaf   : > { %784 = vmatprep.subr.bf16.mxu0 %v1202_v1 }
  0xb2   : > { %785 = vmatpush1.bf16.msra.mxu0 %v1119_v16 }
  0xb3   : > { %786 = vmatprep.subr.bf16.mxu0 %v1202_v1 }
  0xb6   : > { %787 = vmatpush1.bf16.msra.mxu0 %v1120_v17 }
  0xb7   : > { %788 = vmatprep.subr.bf16.mxu0 %v1202_v1 }
  0xba   : > { %789 = vmatpush1.bf16.msra.mxu0 %v1121_v18 }
  0xbb   : > { %790 = vmatprep.subr.bf16.mxu0 %v1202_v1 }
  0xbe   : > { %791 = vmatpush1.bf16.msra.mxu0 %v1122_v19 }
  0xbf   : > { %792 = vmatprep.subr.bf16.mxu0 %v1202_v1 }
  0xc2   : > { %793 = vmatpush1.bf16.msra.mxu0 %v1123_v20 }
  0xc3   : > { %794 = vmatprep.subr.bf16.mxu0 %v1202_v1 }
  0xc6   : > { %795 = vmatpush1.bf16.msra.mxu0 %v1124_v21 }
  0xc7   : > { %796 = vmatprep.subr.bf16.mxu0 %v1202_v1 }
  0xca   : > { %797 = vmatpush1.bf16.msra.mxu0 %v1125_v22 }
  0xcb   : > { %810 = vmatprep.subr.bf16.mxu0 %v1202_v1 }
  0xce   : > { %811 = vmatpush2.bf16.msra.mxu0 %v1126_v23 }
  0xcf   : > { %812 = vmatprep.subr.bf16.mxu0 %v1202_v1 }
  0xd2   : > { %813 = vmatpush2.bf16.msra.mxu0 %v1127_v25 }
 0x16d   : > { %v472_v48 = vpop.f32.mrf.mxu0 }
 0x16e   : > { %v485_v50 = vmul.f32 %v1013_v46, %v472_v48 }
 0x16f   : > { %v474_v51 = vpop.f32.mrf.mxu0 }
 0x170   : > { %v493_v52 = vadd.f32 %v1014_v49, %v485_v50  ;;  %v1128_v50 = vld [vmem:[#allocation4 + $0x8] sm:$0xff]   ;;  %v1206_v51 = vmov 0.0  }
 0x171   : > { %v475_v53 = vpop.f32.mrf.mxu0  ;;  %1053 = vmatprep.subr.bf16.mxu1 %v1206_v51 }
 0x172   : > { %v494_v54 = vmax.f32 %v493_v52, 0.0  ;;  %v1129_v52 = vld [vmem:[#allocation4] sm:$0xff]  }
 0x173   : > { %v476_v55 = vpop.f32.mrf.mxu0 }
 0x174   : > { %v501_v56 = vpack.c.bf16 %v494_v54, %v494_v54  ;;  %v505_v57 = vrot.slane %v494_v54, 2  ;;  %v498_v58 = vrot.slane %v494_v54, 7  ;;  %v502_v59 = vrot.slane %v494_v54, 1 }
 0x175   : > { %v495_v5 = vrot.slane %v494_v54, 6  ;;  %v1044_v54 = vld [vmem:[%s1423_s3 + $0x2] ss:$0 sm:$0xff] }
 0x176   : > { %512 = vrot.lane.b32.xlu0 %v501_v56, %s1205_s19  ;;  %v506_v60 = vsel %vm312_vm2, %v505_v57, 0.0  ;;  %v499_v61 = vsel %vm303_vm0, %v498_v58, 0.0  ;;  %v503_v0 = vsel %vm308_vm1, %v502_v59, 0.0 }
 0x177   : > { %v507_v62 = vpack.c.bf16 %v506_v60, %v506_v60  ;;  %v500_v63 = vpack.c.bf16 %v499_v61, %v499_v61  ;;  %v504_v2 = vpack.c.bf16 %v503_v0, %v503_v0  ;;  %v496_v6 = vsel %vm299_vm4, %v495_v5, 0.0 }
 0x178   : > { %v497_v7 = vpack.c.bf16 %v496_v6, %v496_v6 }
 0x179   : > { %1025 = vmatprep.mubr.msk.bf16.mxu1 %vm344_vm3, %v507_v62  ;;  %509 = vrot.lane.b32.xlu1 %v500_v63, %s1203_s17  ;;  %v846_v62 = vld [vmem:[%s289_s11] sm:$0xff] }
 0x17d   : > { %515 = vrot.lane.b32.xlu1 %v504_v2, %s1204_s18 }
 0x1e8   : > { %v513_v11 = vpop.permute.xlu0 %512 }
 0x1eb   : > { %v510_v8 = vpop.permute.xlu1 %509 }
 0x1ec   : > { %v519_v10 = vsel %vm344_vm3, %v497_v7, %v510_v8 }
 0x1ed   : > { %v521_v13 = vsel %vm348_vm5, %v519_v10, %v513_v11 }
 0x1ef   : > { %v516_v12 = vpop.permute.xlu1 %515 }
 0x1f0   : > { %v523_v14 = vsel %vm351_vm6, %v521_v13, %v516_v12 }
 0x1f1   : > { %642 = vmatmul.mubr.bf16.vlgmr.msra.gmra.mxu1 %v523_v14 }
 0x1f2   : > { %1054 = vmatpush3.bf16.msra.mxu1 %v1128_v50  ;;  %1057 = vmatprep.mubr.msk.bf16.mxu1 %vm1207_vm7, %v1206_v51 }
 0x1f3   : > { %1055 = vmatprep.subr.bf16.mxu1 %v1206_v51 }
 0x1f6   : > { %1056 = vmatpush3.bf16.msra.mxu1 %v1129_v52 }
 0x2b1   : > { %v643_v26 = vpop.f32.mrf.mxu1 }
 0x2b2   : > { %v657_v29 = vmul.f32 %v1027_v24, %v643_v26 }
 0x2b3   : > { %v645_v30 = vpop.f32.mrf.mxu1 }
 0x2b4   : > { %v666_v31 = vadd.f32 %v1029_v28, %v657_v29 }
 0x2b5   : > { %v646_v32 = vpop.f32.mrf.mxu1 }
 0x2b6   : > { %v667_v33 = vmax.f32 %v666_v31, 0.0 }
 0x2b7   : > { %v647_v34 = vpop.f32.mrf.mxu1 }
 0x2b8   : > { %v674_v35 = vpack.c.bf16 %v667_v33, %v667_v33  ;;  %v678_v36 = vrot.slane %v667_v33, 2  ;;  %v671_v37 = vrot.slane %v667_v33, 7  ;;  %v675_v38 = vrot.slane %v667_v33, 1 }
 0x2b9   : > { %v668_v44 = vrot.slane %v667_v33, 6 }
 0x2ba   : > { %685 = vrot.lane.b32.xlu1 %v674_v35, %s1205_s19  ;;  %v679_v1 = vsel %vm312_vm2, %v678_v36, 0.0  ;;  %v672_v39 = vsel %vm303_vm0, %v671_v37, 0.0  ;;  %v676_v42 = vsel %vm308_vm1, %v675_v38, 0.0 }
 0x2bb   : > { %v680_v40 = vpack.c.bf16 %v679_v1, %v679_v1  ;;  %v673_v41 = vpack.c.bf16 %v672_v39, %v672_v39  ;;  %v677_v43 = vpack.c.bf16 %v676_v42, %v676_v42  ;;  %v669_v9 = vsel %vm299_vm4, %v668_v44, 0.0 }
 0x2bc   : > { %v670_v45 = vpack.c.bf16 %v669_v9, %v669_v9 }
 0x2bd   : > { %1040 = vmatprep.mubr.msk.bf16.mxu0 %vm344_vm3, %v680_v40  ;;  %682 = vrot.lane.b32.xlu0 %v673_v41, %s1203_s17 }
 0x2c1   : > { %688 = vrot.lane.b32.xlu0 %v677_v43, %s1204_s18 }
 0x32c   : > { %v686_v47 = vpop.permute.xlu1 %685 }
 0x32f   : > { %v683_v46 = vpop.permute.xlu0 %682 }
 0x330   : > { %v692_v3 = vsel %vm344_vm3, %v670_v45, %v683_v46 }
 0x331   : > { %v694_v4 = vsel %vm348_vm5, %v692_v3, %v686_v47 }
 0x333   : > { %v689_v48 = vpop.permute.xlu0 %688 }
 0x334   : > { %v696_v49 = vsel %vm351_vm6, %v694_v4, %v689_v48 }
 0x335   : > { %815 = vmatmul.mubr.bf16.vlgmr.msra.gmra.mxu0 %v696_v49 }
 0x3f5   : > { %v816_v53 = vpop.f32.mrf.mxu0 }
 0x3f6   : > { %v830_v55 = vmul.f32 %v1042_v27, %v816_v53 }
 0x3f7   : > { %v818_v56 = vpop.f32.mrf.mxu0 }
 0x3f8   : > { %v839_v57 = vadd.f32 %v1044_v54, %v830_v55 }
 0x3f9   : > { %v819_v58 = vpop.f32.mrf.mxu0 }
 0x3fa   : > { %v840_v59 = vmax.f32 %v839_v57, 0.0 }
 0x3fb   : > { %v820_v60 = vpop.f32.mrf.mxu0 }
 0x3fc   : > { %v841_v61 = vpack.c.bf16 %v840_v59, %v840_v59 }
 0x3fe   : > { %1058 = vmatmul.mubr.msk.bf16.vlgmr.msra.gmra.mxu1 %vm344_vm3, %v841_v61 }
 0x4be   : > { %v896_v63 = vpop.f32.mrf.mxu1 }
 0x4bf   : > { %v897_v0 = vadd.f32 %v896_v63, %v846_v62 }
 0x4c0   : > { %v1059_v2 = vpop.f32.mrf.mxu1 }
 0x4c1   : > { %902 = vst.msk [vmem:[%s293_s15] sm:$0xff] %vm344_vm3, %v897_v0 }
 0x4c2   : > { %v899_v5 = vpop.f32.mrf.mxu1 }
 0x4c4   : > { %v1060_v6 = vpop.f32.mrf.mxu1 }
 0x4c5 PF: > { %s18_s21 = sadd.s32 1, %s1196_s21  }
 0x4c6   : > { %p15_p2 = scmp.ge.s32.totalorder %s18_s21, 4  }
 0x4c8   :  { %17 = sbr.rel (!%p15_p2) target bundleno = 2 (0x2), region = 92 }
 0x4cd   :  { %922 = vsyncpa [#allocation3], 1 }
 0x4ce   :  { %924 = vsyncpa [#allocation3 + $0x1], 1 }
 0x4cf   :  { %925 = vsyncpa [#allocation5], 1 }

// kernel: _lambda_.6
= control target key start
LH: loop header
LB: loop body
LE: loop exit
PB: predicated region body
PF: predicated region fallthrough
CT: control target
= control target key end

     0   :  { %15 = vsyncpa [#allocation3], 0  ;;  %s1561_s0 = inlined_call_operand.vmem [shape: f32[2,8,32], index: 0, kind: input, shape index: {}, may-alias: {0,1}]   ;;  %s1562_s1 = inlined_call_operand.vmem [shape: f32[2,8,32], index: 1, kind: input, shape index: {}, may-alias: {0,1}]   ;;  %s1563_s2 = inlined_call_operand.hbm [shape: bf16[32,32], index: 2, kind: input, shape index: {}]   ;;  %s1564_s3 = inlined_call_operand.vmem [shape: f32[1,32], index: 3, kind: input, shape index: {}, may-alias: {3,7,9}]   ;;  %s1565_s4 = inlined_call_operand.hbm [shape: bf16[32,64], index: 4, kind: input, shape index: {}]   ;;  %s1566_s5 = inlined_call_operand.vmem [shape: f32[1,64], index: 5, kind: input, shape index: {}]   ;;  %s1567_s6 = inlined_call_operand.hbm [shape: bf16[32,32], index: 6, kind: input, shape index: {}]   ;;  %s1568_s7 = inlined_call_operand.vmem [shape: f32[1,32], index: 7, kind: input, shape index: {}, may-alias: {3,7,9}]   ;;  %s1569_s8 = inlined_call_operand.vmem [shape: f32[1,32], index: 8, kind: input, shape index: {}]   ;;  %s1570_s9 = inlined_call_operand.vmem [shape: f32[1,32], index: 9, kind: input, shape index: {}, may-alias: {3,7,9}]   ;;  %s1571_s10 = inlined_call_operand.vmem [shape: f32[2,8,32], index: 10, kind: output, shape index: {}]  }
   0x1   :  { %16 = vsyncpa [#allocation5], 0  ;;  %s1385_s13 = smov 0   ;;  %s1387_s14 = smov 0  }
   0x2   :  { %s1389_s15 = smov 0  }
   0x3 LB: > { %s1031_s16 = sadd.s32 4294967295, %s1317_s15   ;;  %p1033_p0 = scmp.ge.s32.totalorder %s1317_s15, 1  ;;  %s1317_s15 = sphi %s1389_s15, %s22_s15   ;;  %s1313_s14 = sphi %s1387_s14, %s1577_s14   ;;  %s1309_s13 = sphi %s1385_s13, %s1576_s13  }
   0x4   : > { %p289_p1 = scmp.lt.s32.totalorder %s1317_s15, 3  ;;  %p1403_p2 = scmp.eq.s32.totalorder %s1031_s16, 0 }
   0x5   : > { %s1319_s19 = smov [#allocation4]   ;;  %s34_s22 = sadd.s32 1, %s1313_s14 }
   0x6   : > { %p1407_p3 = pnand %p1033_p0, %p289_p1  ;;  %s317_s20 = sshll.u32 %s1319_s19, 4  ;;  %s318_s20 = int_to_ptr.vmem [resolvable:$true] %s317_s20 }
   0x7   : > { %p1420_p6 = scmp.ge.s32.totalorder %s34_s22, 2  ;;  %s1320_s24 = smov [#allocation2]  }
   0x8   : > { %p1142_p4 = pneg %p1407_p3  ;;  %s301_s25 = sshll.u32 %s1320_s24, 4  ;;  %s302_s25 = int_to_ptr.vmem [resolvable:$true] %s301_s25 }
   0x9   : > { %s1220_s26 = scalar_lea.vmem %s318_s20, 256  ;;  %p1228_p11 = scmp.lt.s32.totalorder %s318_s20, %s318_s20 }
   0xa   : > { %p1415_p5 = pnand %p1403_p2, %p1142_p4  ;;  %p1221_p8 = scmp.ne.s32.totalorder %s318_s20, %s1220_s26 }
   0xb   : > { %p1229_p12 = scmp.lt.s32.totalorder %s1220_s26, %s1220_s26 }
   0xc   : > { %p1211_p7 = pneg %p1415_p5 }
   0xd   : > { %p1230_p13 = por %p1229_p12, %p1228_p11 }
   0xe   : > { %p1223_p9 = pnand %p1221_p8, %p1211_p7 }
  0x10   : > { %p1224_p10 = pneg %p1223_p9 }
  0x12   : > { %p1231_p0 = pnand %p1230_p13, %p1224_p10 }
  0x14   : > { %1234 = shalt.err (!%p1231_p0)
}
  0x15   : > { %s1321_s27 = smov 64   ;;  %s1322_s28 = smov 4  }
  0x16   : > { %1148 = dma.hbm_to_vmem [thread:$0]  (!%p1415_p5), %s1565_s4, 256, %s318_s20, [#allocation5], %s1321_s27, %s1321_s27, %s1322_s28  }
  0x17   : > { %s1579_s22 = smov (%p1420_p6, %s34_s22), 0  ;;  %s1246_s11 = scalar_lea.vmem %s302_s25, 256 }
  0x18   : > { %p1247_p1 = scmp.ne.s32.totalorder %s302_s25, %s1246_s11  ;;  %p1254_p9 = scmp.lt.s32.totalorder %s302_s25, %s302_s25 }
  0x19   : > { %p1255_p10 = scmp.lt.s32.totalorder %s1246_s11, %s1246_s11 }
  0x1a   : > { %p1249_p4 = pnand %p1247_p1, %p1211_p7 }
  0x1b   : > { %p1256_p11 = por %p1255_p10, %p1254_p9 }
  0x1c   : > { %p1250_p8 = pneg %p1249_p4 }
  0x1e   : > { %p1257_p12 = pnand %p1256_p11, %p1250_p8 }
  0x20   : > { %1260 = shalt.err (!%p1257_p12)
}
  0x21   : > { %1145 = dma.hbm_to_vmem [thread:$0]  (!%p1415_p5), %s1563_s2, 256, %s302_s25, [#allocation3], %s1321_s27, %s1321_s27, %s1322_s28  }
  0x22   : > { %s1323_s19 = smov [#allocation6]  }
  0x23   : > { %s333_s20 = sshll.u32 %s1323_s19, 4  ;;  %s334_s20 = int_to_ptr.vmem [resolvable:$true] %s333_s20 }
  0x24   : > { %s1272_s23 = scalar_lea.vmem %s334_s20, 256  ;;  %p1280_p1 = scmp.lt.s32.totalorder %s334_s20, %s334_s20 }
  0x25   : > { %p1273_p6 = scmp.ne.s32.totalorder %s334_s20, %s1272_s23  ;;  %p1281_p4 = scmp.lt.s32.totalorder %s1272_s23, %s1272_s23 }
  0x27   : > { %p1275_p13 = pnand %p1273_p6, %p1211_p7  ;;  %p1282_p8 = por %p1281_p4, %p1280_p1 }
  0x29   : > { %p1276_p0 = pneg %p1275_p13 }
  0x2b   : > { %p1283_p9 = pnand %p1282_p8, %p1276_p0 }
  0x2d   : > { %1286 = shalt.err (!%p1283_p9)
}
  0x2e   : > { %1151 = dma.hbm_to_vmem [thread:$0]  (!%p1415_p5), %s1567_s6, 256, %s334_s20, [#allocation5], %s1321_s27, %s1321_s27, %s1322_s28  }
  0x2f   : > { %375 = sbr.rel (%p1407_p3) target bundleno = 1709 (0x6ad), region = 60 }
  0x34   : > { %1300 = dma.done.wait (%p1403_p2), [#allocation3], 256  }
  0x35   : > { %1302 = vsyncadd (%p1403_p2), [#allocation3], 4294967040 }
  0x36   : > { %1304 = dma.done.wait (%p1403_p2), [#allocation5], 512  }
  0x37   : > { %1306 = vsyncadd (%p1403_p2), [#allocation5], 4294966784  ;;  %p429_p7 = scmp.lt.s32.totalorder %s1309_s13, 1  ;;  %v1324_v0 = vmov 0.0   ;;  %vm1325_vm0 = vmmov 0   ;;  %v1193_v1 = vld [vmem:[#allocation4 + $0x8] sm:$0xff]  }
  0x38   : > { %1090 = vmatprep.subr.bf16.mxu1 %v1324_v0  ;;  %1082 = vmatprep.subr.bf16.mxu0 %v1324_v0  ;;  %v1194_v2 = vld [vmem:[#allocation2 + $0x8] sm:$0xff]   ;;  %v1195_v3 = vld [vmem:[#allocation4] sm:$0xff]   ;;  %v1196_v4 = vld [vmem:[#allocation2] sm:$0xff]   ;;  %vm474_vm1 = vcmask 261120   ;;  %vm587_vm2 = vcmask 130048   ;;  %s1326_s16 = smov 112  }
  0x39   : > { %1094 = vmatprep.mubr.msk.bf16.mxu1 %vm1325_vm0, %v1324_v0  ;;  %s1581_s13 = smov (!%p429_p7, %s1309_s13), 1  ;;  %1086 = vmatprep.mubr.msk.bf16.mxu0 %vm1325_vm0, %v1324_v0  ;;  %v1049_v9 = vld [vmem:[%s1566_s5] ss:$0 sm:$0xff]  ;;  %vm634_vm3 = vcmask 64512   ;;  %s1327_s19 = smov 96   ;;  %vm653_vm4 = vcmask 1043456  }
  0x3a   : > { %s1481_s18 = sshll.u32 %s1581_s13, 3  ;;  %1091 = vmatpush3.bf16.msra.mxu1 %v1193_v1  ;;  %1083 = vmatpush3.bf16.msra.mxu0 %v1194_v2  ;;  %v1045_v10 = vld [vmem:[%s1564_s3] ss:$0 sm:$0xff]  ;;  %s1328_s20 = smov 80   ;;  %v1197_v59 = vld [vmem:[#allocation6 + $0x8] sm:$0xff]  }
  0x3b   : > { %s439_s26 = scalar_lea.vmem %s1562_s1, %s1481_s18  ;;  %s435_s29 = scalar_lea.vmem %s1561_s0, %s1481_s18  ;;  %1092 = vmatprep.subr.bf16.mxu1 %v1324_v0  ;;  %1084 = vmatprep.subr.bf16.mxu0 %v1324_v0  ;;  %v1198_v60 = vld [vmem:[#allocation6] sm:$0xff]  }
  0x3c   : > { %v449_v5 = vld [vmem:[%s439_s26] sm:$0xff]  ;;  %s1329_s23 = smov 16   ;;  %s446_s13 = scalar_lea.vmem %s1571_s10, %s1481_s18 }
  0x3d   : > { %v1493_v6 = vld [vmem:[%s435_s29] sm:$0xff]  ;;  %v518_v7 = vpack.c.bf16 %v449_v5, %v449_v5 }
  0x3e   : > { %1093 = vmatpush3.bf16.msra.mxu1 %v1195_v3  ;;  %v450_v8 = vpack.c.bf16 %v1493_v6, %v1493_v6  ;;  %1085 = vmatpush3.bf16.msra.mxu0 %v1196_v4 }
  0x3f   : > { %1104 = vmatprep.subr.bf16.mxu1 %v1324_v0  ;;  %1098 = vmatprep.subr.bf16.mxu0 %v1324_v0 }
  0x41   : > { %1095 = vmatmul.mubr.msk.bf16.vlgmr.msra.gmra.mxu1 %vm474_vm1, %v518_v7  ;;  %1087 = vmatmul.mubr.msk.bf16.vlgmr.msra.gmra.mxu0 %vm474_vm1, %v450_v8 }
  0x42   : > { %1106 = vmatprep.mubr.msk.bf16.mxu1 %vm1325_vm0, %v1324_v0  ;;  %1100 = vmatprep.mubr.msk.bf16.mxu0 %vm1325_vm0, %v1324_v0 }
 0x101   : > { %v579_v11 = vpop.f32.mrf.mxu1  ;;  %v512_v13 = vpop.f32.mrf.mxu0 }
 0x102   : > { %v580_v12 = vadd.f32 %v1049_v9, %v579_v11  ;;  %v513_v15 = vadd.f32 %v1045_v10, %v512_v13 }
 0x103   : > { %v1096_v14 = vpop.f32.mrf.mxu1  ;;  %v1088_v17 = vpop.f32.mrf.mxu0 }
 0x104   : > { %v586_v16 = vpack.c.bf16 %v580_v12, %v580_v12  ;;  %v585_v19 = vpack.c.bf16 %v513_v15, %v513_v15 }
 0x105   : > { %v582_v18 = vpop.f32.mrf.mxu1  ;;  %v515_v21 = vpop.f32.mrf.mxu0 }
 0x106   : > { %701 = vrot.lane.b32.xlu0 %v586_v16, %s1326_s16  ;;  %v592_v20 = vsel %vm587_vm2, %v586_v16, 0 }
 0x107   : > { %v1097_v22 = vpop.f32.mrf.mxu1  ;;  %1099 = vmatpush3.bf16.xpose.msra.mxu0 %v592_v20  ;;  %v1089_v23 = vpop.f32.mrf.mxu0 }
 0x108   : > { %1110 = vmatprep.subr.bf16.mxu0 %v1324_v0 }
 0x10a   : > { %699 = vrot.lane.b32.xlu0 %v585_v19, %s1326_s16 }
 0x10e   : > { %1101 = vmatmul.mubr.msk.bf16.vlgmr.msra.gmra.mxu0 %vm587_vm2, %v585_v19 }
 0x10f   : > { %1112 = vmatprep.mubr.msk.bf16.mxu0 %vm1325_vm0, %v1324_v0 }
 0x178   : > { %v702_v24 = vpop.permute.xlu0 %701 }
 0x179   : > { %v707_v25 = vsel %vm587_vm2, %v702_v24, 0 }
 0x17a   : > { %1111 = vmatpush3.bf16.xpose.msra.mxu0 %v707_v25 }
 0x17b   : > { %1122 = vmatprep.subr.bf16.mxu0 %v1324_v0 }
 0x17c   : > { %v700_v26 = vpop.permute.xlu0 %699 }
 0x181   : > { %1113 = vmatmul.mubr.msk.bf16.vlgmr.msra.gmra.mxu0 %vm587_vm2, %v700_v26 }
 0x182   : > { %1126 = vmatprep.mubr.msk.bf16.mxu0 %vm1325_vm0, %v1324_v0  ;;  %1123 = vmatpush3.bf16.msra.mxu0 %v1197_v59 }
 0x183   : > { %1124 = vmatprep.subr.bf16.mxu0 %v1324_v0 }
 0x186   : > { %1125 = vmatpush3.bf16.msra.mxu0 %v1198_v60 }
 0x1ce   : > { %v628_v27 = vpop.f32.mrf.mxu0 }
 0x1cf   : > { %v635_v28 = vsel %vm634_vm3, %v628_v27, -inf }
 0x1d0   : > { %636 = vmax.xlane.f32.xlu1 %v635_v28  ;;  %v1102_v29 = vpop.f32.mrf.mxu0  ;;  %v1062_v28 = vld [vmem:[%s1570_s9] ss:$0 sm:$0xff] }
 0x1d2   : > { %v631_v30 = vpop.f32.mrf.mxu0 }
 0x1d4   : > { %v1103_v31 = vpop.f32.mrf.mxu0 }
 0x241   : > { %v743_v32 = vpop.f32.mrf.mxu0 }
 0x242   : > { %v749_v33 = vsel %vm634_vm3, %v743_v32, -inf }
 0x243   : > { %750 = vmax.xlane.f32.xlu1 %v749_v33  ;;  %v1114_v34 = vpop.f32.mrf.mxu0 }
 0x245   : > { %v746_v35 = vpop.f32.mrf.mxu0 }
 0x247   : > { %v1115_v36 = vpop.f32.mrf.mxu0 }
 0x254   : > { %648 = vrot.lane.b32.xlu1 %v586_v16, %s1327_s19 }
 0x259   : > { %v637_v37 = vpop.xlane.xlu1 %636 }
 0x25a   : > { %v638_v38 = vsub.f32 %v628_v27, %v637_v37 }
 0x25c   : > { %v639_v39 = vmul.f32 1.442695, %v638_v38 }
 0x25e   : > { %1199 = vpow2.f32 %v639_v39 }
 0x26b   : > { %v1200_v40 = vpop.eup %1199 }
 0x26c   : > { %v641_v41 = vsel %vm634_vm3, %v1200_v40, 0.0 }
 0x26d   : > { %642 = vadd.xlane.f32.xlu0 %v641_v41 }
 0x2cc   : > { %v751_v42 = vpop.xlane.xlu1 %750 }
 0x2cd   : > { %v752_v43 = vsub.f32 %v743_v32, %v751_v42 }
 0x2cf   : > { %v753_v44 = vmul.f32 1.442695, %v752_v43 }
 0x2d0   : > { %v649_v45 = vpop.permute.xlu1 %648 }
 0x2d1   : > { %1201 = vpow2.f32 %v753_v44  ;;  %v655_v46 = vsel %vm653_vm4, %v649_v45, 0 }
 0x2d2   : > { %1105 = vmatpush3.bf16.msra.mxu1 %v655_v46 }
 0x2d3   : > { %1116 = vmatprep.subr.bf16.mxu1 %v1324_v0 }
 0x2de   : > { %v1202_v47 = vpop.eup %1201 }
 0x2df   : > { %v755_v48 = vsel %vm634_vm3, %v1202_v47, 0.0 }
 0x2e0   : > { %756 = vadd.xlane.f32.xlu1 %v755_v48 }
 0x2f1   : > { %761 = vrot.lane.b32.xlu1 %v586_v16, %s1328_s20 }
 0x2f6   : > { %v643_v49 = vpop.xlane.xlu0 %642 }
 0x2f7   : > { %1203 = vrcp.f32 %v643_v49 }
 0x304   : > { %v1204_v50 = vpop.eup %1203 }
 0x305   : > { %v645_v51 = vmul.f32 %v1204_v50, %v1200_v40 }
 0x307   : > { %v646_v52 = vpack.c.bf16 %v645_v51, %v645_v51 }
 0x309   : > { %1107 = vmatmul.mubr.msk.bf16.vlgmr.msra.gmra.mxu1 %vm634_vm3, %v646_v52 }
 0x30a   : > { %1118 = vmatprep.mubr.msk.bf16.mxu1 %vm1325_vm0, %v1324_v0  ;;  %v1057_v0 = vld [vmem:[%s1568_s7] ss:$0 sm:$0xff] }
 0x369   : > { %v757_v53 = vpop.xlane.xlu1 %756 }
 0x36a   : > { %1205 = vrcp.f32 %v757_v53 }
 0x36d   : > { %v762_v54 = vpop.permute.xlu1 %761 }
 0x36e   : > { %v767_v55 = vsel %vm653_vm4, %v762_v54, 0 }
 0x36f   : > { %1117 = vmatpush3.bf16.msra.mxu1 %v767_v55 }
 0x377   : > { %v1206_v56 = vpop.eup %1205 }
 0x378   : > { %v759_v57 = vmul.f32 %v1206_v56, %v1202_v47 }
 0x37a   : > { %v760_v58 = vpack.c.bf16 %v759_v57, %v759_v57 }
 0x37c   : > { %1119 = vmatmul.mubr.msk.bf16.vlgmr.msra.gmra.mxu1 %vm634_vm3, %v760_v58 }
 0x3c9   : > { %v691_v61 = vpop.f32.mrf.mxu1 }
 0x3ca   : > { %v697_v8 = vpack.c.bf16 %v691_v61, %v691_v61 }
 0x3cb   : > { %v1108_v62 = vpop.f32.mrf.mxu1 }
 0x3cd   : > { %v694_v63 = vpop.f32.mrf.mxu1 }
 0x3cf   : > { %v1109_v1 = vpop.f32.mrf.mxu1 }
 0x43c   : > { %v803_v2 = vpop.f32.mrf.mxu1 }
 0x43d   : > { %v809_v3 = vpack.c.bf16 %v803_v2, %v803_v2 }
 0x43e   : > { %v1120_v4 = vpop.f32.mrf.mxu1 }
 0x43f   : > { %811 = vrot.lane.b32.xlu1 %v809_v3, %s1329_s23 }
 0x440   : > { %v806_v5 = vpop.f32.mrf.mxu1 }
 0x442   : > { %v1121_v7 = vpop.f32.mrf.mxu1 }
 0x4b1   : > { %v812_v9 = vpop.permute.xlu1 %811 }
 0x4b2   : > { %v815_v10 = vsel %vm587_vm2, %v697_v8, %v812_v9 }
 0x4b3   : > { %1127 = vmatmul.mubr.msk.bf16.vlgmr.msra.gmra.mxu0 %vm474_vm1, %v815_v10 }
 0x573   : > { %v875_v11 = vpop.f32.mrf.mxu0 }
 0x574   : > { %v876_v12 = vadd.f32 %v1057_v0, %v875_v11 }
 0x575   : > { %v1128_v13 = vpop.f32.mrf.mxu0 }
 0x576   : > { %v881_v14 = vadd.f32 %v876_v12, %v1493_v6  ;;  %v1061_v6 = vld [vmem:[%s1569_s8] ss:$0 sm:$0xff] }
 0x577   : > { %v878_v15 = vpop.f32.mrf.mxu0 }
 0x578   : > { %v882_v16 = vsel %vm474_vm1, %v881_v14, 0.0 }
 0x579   : > { %883 = vadd.xlane.f32.xlu1 %v882_v16  ;;  %v1129_v17 = vpop.f32.mrf.mxu0 }
 0x602   : > { %v884_v18 = vpop.xlane.xlu1 %883 }
 0x603   : > { %v886_v19 = vmul.f32 0.03125, %v884_v18 }
 0x605   : > { %v887_v20 = vsub.f32 %v881_v14, %v886_v19 }
 0x607   : > { %v888_v21 = vmul.f32 %v887_v20, %v887_v20 }
 0x609   : > { %v889_v22 = vsel %vm474_vm1, %v888_v21, 0.0 }
 0x60a   : > { %890 = vadd.xlane.f32.xlu0 %v889_v22 }
 0x693   : > { %v891_v23 = vpop.xlane.xlu0 %890 }
 0x694   : > { %v892_v24 = vmul.f32 0.03125, %v891_v23 }
 0x696   : > { %v893_v25 = vadd.f32 1e-05, %v892_v24 }
 0x698   : > { %1207 = vrsqrt.f32 %v893_v25 }
 0x6a5   : > { %v1208_v26 = vpop.eup %1207 }
 0x6a6   : > { %v895_v27 = vmul.f32 %v1208_v26, %v887_v20 }
 0x6a8   : > { %v903_v29 = vmul.f32 %v1061_v6, %v895_v27 }
 0x6aa   : > { %v911_v30 = vadd.f32 %v1062_v28, %v903_v29 }
 0x6ac   : > { %912 = vst.msk [vmem:[%s446_s13] sm:$0xff] %vm474_vm1, %v911_v30 }
 0x6ad PF: > { %s22_s15 = sadd.s32 1, %s1317_s15   ;;  %s1576_s13 = smov %s1313_s14 }
 0x6ae   : > { %p19_p2 = scmp.ge.s32.totalorder %s22_s15, 4   ;;  %s1577_s14 = smov %s1579_s22 }
 0x6b0   :  { %21 = sbr.rel (!%p19_p2) target bundleno = 3 (0x3), region = 106 }
 0x6b5   :  { %938 = vsyncpa [#allocation3], 1 }
 0x6b6   :  { %940 = vsyncpa [#allocation3 + $0x1], 1 }
 0x6b7   :  { %941 = vsyncpa [#allocation5], 1 }

</bundles_post_ra>
